<compile_context>
chip_gen: v6e
topology: v6e:2x2x1
jax: 0.10.0
libtpu: 0.0.40
codegen_flags: <defaults>
</compile_context>

<pallas_src>
import functools

import jax
import jax.numpy as jnp
from jax import lax
from jax.experimental import pallas as pl
from jax.experimental.pallas import tpu as pltpu


def _round_up(x, m):
    return (x + m - 1) // m * m


# ----------------------------------------------------------------------------
# Pallas kernel: four phase GEMMs (2 dots each, K = 2*Cin) + folded bias + ReLU.
#   p_ref: (tm, 9*Cin) bf16  -- im2col of the ORIGINAL image, tap-major
#                               (tap t = 3*row_off + col_off), channel-minor.
#   w_ref: (8, 2*Cin, Cp) bf16 -- per-phase (upper, lower) weight pairs, BN scale
#                                 already folded in.
#   b_ref: (1, Cp) f32       -- folded conv-bias + BatchNorm shift.
#   o_ref: (tm, 4*Cp) bf16   -- 4 output phases side by side (a-major, b-minor).
# ----------------------------------------------------------------------------
def up_conv_kernel(p_ref, w_ref, b_ref, o_ref, *, cin, cp):
    p = p_ref[...]
    bias = b_ref[...]
    for a in range(2):
        for b in range(2):
            ph = 2 * a + b
            t0 = 3 * a + b          # upper tap pair: taps {t0, t0+1}  (row off a)
            t1 = t0 + 3             # lower tap pair: taps {t1, t1+1}  (row off a+1)
            acc = jnp.dot(p[:, t0 * cin:(t0 + 2) * cin], w_ref[2 * ph],
                          preferred_element_type=jnp.float32)
            acc = acc + jnp.dot(p[:, t1 * cin:(t1 + 2) * cin], w_ref[2 * ph + 1],
                                preferred_element_type=jnp.float32)
            o_ref[:, ph * cp:(ph + 1) * cp] = jnp.maximum(
                acc + bias, 0.0).astype(o_ref.dtype)


# ----------------------------------------------------------------------------
# Phase-weight construction (f32, BN scale folded in before the bf16 cast).
# For vertical phase a: padded-row offset a   <- w[ky=0]        (a=0) / w[0]+w[1] (a=1)
#                       padded-row offset a+1 <- w[ky=1]+w[2]   (a=0) / w[2]      (a=1)
# and identically for horizontal phase b over kx.
# ----------------------------------------------------------------------------
def _split_pair(arr, phase):
    if phase == 0:
        return arr[0], arr[1] + arr[2]
    return arr[0] + arr[1], arr[2]


def _phase_weight_pairs(w_conv, scale):
    # w_conv: (Cout, Cin, 3, 3) -> (ky, kx, Cin, Cout), BN scale folded (f32).
    w = jnp.transpose(w_conv, (2, 3, 1, 0)).astype(jnp.float32)
    w = w * scale[None, None, None, :]
    cin = w.shape[2]
    mats = []
    for a in range(2):
        rows = _split_pair(w, a)                    # 2 x (3, Cin, Cout) over kx
        for b in range(2):
            for ry in range(2):
                c0, c1 = _split_pair(rows[ry], b)   # 2 x (Cin, Cout)
                # K order matches patch columns: tap (rx=0) channels, tap (rx=1).
                mats.append(jnp.concatenate([c0, c1], axis=0))  # (2*Cin, Cout)
    return mats                                     # len 8, index = 2*phase + ry


# ----------------------------------------------------------------------------
# Wrapper: bf16 cast, pad, original-resolution im2col, then the row-tiled kernel.
# ----------------------------------------------------------------------------
def up_conv_forward(x, params, *, eps=1e-5, tm=None,
                    vmem_budget_bytes=24 * 1024 * 1024):
    """x: (B, Cin, H, W) NCHW f32 -> (B, Cout, 2H, 2W) NCHW f32."""
    w_conv, b_conv, gamma, beta, r_mean, r_var = params
    B, Cin, H, W = x.shape
    Cout = w_conv.shape[0]
    Hup, Wup = 2 * H, 2 * W
    Cp = _round_up(Cout, 128)
    K = 9 * Cin
    M = B * H * W

    # Activations: NCHW -> NHWC, bf16 FIRST (halves all XLA intermediates), pad by
    # 1 (conv halo at ORIGINAL resolution), 3x3 im2col shared by all 4 phases.
    xn = jnp.transpose(x, (0, 2, 3, 1)).astype(jnp.bfloat16)
    xp = jnp.pad(xn, ((0, 0), (1, 1), (1, 1), (0, 0)))
    patches = jnp.concatenate(
        [xp[:, ro:ro + H, co:co + W, :] for ro in range(3) for co in range(3)],
        axis=-1).reshape(M, K)                                    # (M, 9*Cin) bf16

    # Weights: fold BN scale (f32), build 8 per-phase pairs, pad Cout -> Cp,
    # single bf16 cast.
    scale = gamma / jnp.sqrt(r_var + eps)
    mats = _phase_weight_pairs(w_conv, scale)
    w_all = jnp.stack([jnp.pad(m, ((0, 0), (0, Cp - Cout))) for m in mats], axis=0)
    w_all = w_all.astype(jnp.bfloat16)                            # (8, 2*Cin, Cp)
    bias = (b_conv - r_mean) * scale + beta
    bias_p = jnp.pad(bias, (0, Cp - Cout)).reshape(1, Cp).astype(jnp.float32)

    # Row-tile selection against a conservative VMEM budget (double-buffered
    # activation + output tiles, resident weights). Safe on v5e/v6e/v7x.
    if tm is None:
        w_bytes = 8 * 2 * Cin * Cp * 2 + 4 * Cp * 4
        tm = 1024
        while tm > 256 and (2 * (tm * K * 2) + 2 * (tm * 4 * Cp * 2) + w_bytes
                            ) > vmem_budget_bytes:
            tm //= 2
    tm = min(tm, _round_up(M, 256))
    if M >= 2 * 256:
        # Prefer >= 2 grid steps so v7x's 2 TensorCores both get work.
        tm = min(tm, max(256, _round_up((M + 1) // 2, 256)))
    Mpad = _round_up(M, tm)
    patches = jnp.pad(patches, ((0, Mpad - M), (0, 0)))

    kernel = functools.partial(up_conv_kernel, cin=Cin, cp=Cp)
    cost = pl.CostEstimate(
        flops=32 * Mpad * Cin * Cp,
        transcendentals=0,
        bytes_accessed=Mpad * K * 2 + 8 * 2 * Cin * Cp * 2 + Cp * 4
        + Mpad * 4 * Cp * 2)

    out = pl.pallas_call(
        kernel,
        grid=(Mpad // tm,),
        in_specs=[
            pl.BlockSpec((tm, K), lambda i: (i, 0)),              # streamed im2col
            pl.BlockSpec((8, 2 * Cin, Cp), lambda i: (0, 0, 0)),  # resident weights
            pl.BlockSpec((1, Cp), lambda i: (0, 0)),              # folded bias
        ],
        out_specs=pl.BlockSpec((tm, 4 * Cp), lambda i: (i, 0)),
        out_shape=jax.ShapeDtypeStruct((Mpad, 4 * Cp), jnp.bfloat16),
        compiler_params=pltpu.CompilerParams(
            dimension_semantics=("parallel",),
            vmem_limit_bytes=48 * 1024 * 1024),
        cost_estimate=cost,
    )(patches, w_all, bias_p)

    # Un-pad, interleave the 4 phases into the upsampled grid, back to NCHW f32.
    y = out[:M].reshape(B, H, W, 2, 2, Cp)[..., :Cout]
    y = jnp.transpose(y, (0, 1, 3, 2, 4, 5)).reshape(B, Hup, Wup, Cout)
    return jnp.transpose(y, (0, 3, 1, 2)).astype(jnp.float32)


# ----------------------------------------------------------------------------
# Deterministic parameter init (PyTorch-style Conv2d uniform; non-trivial BN
# running stats so the folded scale/shift is exercised).
# ----------------------------------------------------------------------------
def make_params(key, ch_in, ch_out):
    k1, k2, k3, k4, k5, k6 = jax.random.split(key, 6)
    bound = 1.0 / jnp.sqrt(float(ch_in * 9))
    w_conv = jax.random.uniform(k1, (ch_out, ch_in, 3, 3), jnp.float32, -bound, bound)
    b_conv = jax.random.uniform(k2, (ch_out,), jnp.float32, -bound, bound)
    gamma = jax.random.uniform(k3, (ch_out,), jnp.float32, 0.5, 1.5)
    beta = jax.random.uniform(k4, (ch_out,), jnp.float32, -0.5, 0.5)
    r_mean = jax.random.uniform(k5, (ch_out,), jnp.float32, -0.5, 0.5)
    r_var = jax.random.uniform(k6, (ch_out,), jnp.float32, 0.5, 1.5)
    return (w_conv, b_conv, gamma, beta, r_mean, r_var)


# ----------------------------------------------------------------------------
# Pure-JAX reference of the module forward (correctness check only).
# ----------------------------------------------------------------------------
def reference(x, params, *, eps=1e-5):
    w_conv, b_conv, gamma, beta, r_mean, r_var = params
    xu = jnp.repeat(jnp.repeat(x, 2, axis=2), 2, axis=3)          # nearest x2, NCHW
    y = lax.conv_general_dilated(
        xu, w_conv, window_strides=(1, 1), padding=((1, 1), (1, 1)),
        dimension_numbers=('NCHW', 'OIHW', 'NCHW'),
        precision=lax.Precision.HIGHEST)
    y = y + b_conv[None, :, None, None]
    scale = gamma / jnp.sqrt(r_var + eps)
    shift = beta - r_mean * scale
    y = y * scale[None, :, None, None] + shift[None, :, None, None]
    return jnp.maximum(y, 0.0)


if __name__ == "__main__":
    B, CH_IN, CH_OUT, H, W = 2, 4, 8, 16, 16

    key = jax.random.PRNGKey(0)
    kx, kp = jax.random.split(key)
    x = jax.random.normal(kx, (B, CH_IN, H, W), jnp.float32)       # NCHW input
    params = make_params(kp, CH_IN, CH_OUT)

    fwd = jax.jit(up_conv_forward)
    y = fwd(x, params)
    jax.block_until_ready(y)

    assert y.shape == (B, CH_OUT, 2 * H, 2 * W)

    # Check against the f32 reference.  Tolerances accommodate the bf16 MXU
    # operands / bf16 output of the kernel (f32 accumulation inside).
    ref = reference(x, params)
    assert jnp.allclose(y, ref, atol=1e-1, rtol=5e-2)
    assert float(jnp.mean(jnp.abs(y - ref))) < 2e-2

    print("KERNEL_OK")
</pallas_src>

<mosaic_0001>
module attributes {stable_mosaic.version = 11 : i64} {
  func.func @up_conv_kernel(%arg0: i32, %arg1: memref<256x36xbf16, #tpu.memory_space<vmem>>, %arg2: memref<8x8x128xbf16, #tpu.memory_space<vmem>>, %arg3: memref<1x128xf32, #tpu.memory_space<vmem>>, %arg4: memref<256x512xbf16, #tpu.memory_space<vmem>>) attributes {dimension_semantics = [#tpu.dimension_semantics<parallel>], iteration_bounds = array<i64: 2>, scalar_prefetch = 0 : i64, scratch_operands = 0 : i64, tpu.core_type = #tpu.core_type<tc>, window_params = [{transform_indices = @transform_0, window_bounds = array<i64: 256, 36>}, {pipeline_mode = #tpu.pipeline_mode<synchronous>, transform_indices = @transform_1, window_bounds = array<i64: 8, 8, 128>}, {pipeline_mode = #tpu.pipeline_mode<synchronous>, transform_indices = @transform_2, window_bounds = array<i64: 1, 128>}, {transform_indices = @transform_3, window_bounds = array<i64: 256, 512>}]} {
    %c0 = arith.constant 0 : index
    %c0_0 = arith.constant 0 : index
    %0 = vector.load %arg1[%c0, %c0_0] : memref<256x36xbf16, #tpu.memory_space<vmem>>, vector<256x36xbf16>
    %c0_1 = arith.constant 0 : index
    %c0_2 = arith.constant 0 : index
    %1 = vector.load %arg3[%c0_1, %c0_2] : memref<1x128xf32, #tpu.memory_space<vmem>>, vector<1x128xf32>
    %2 = vector.extract_strided_slice %0 {offsets = [0, 0], sizes = [256, 8], strides = [1, 1]} : vector<256x36xbf16> to vector<256x8xbf16>
    %c0_3 = arith.constant 0 : index
    %c0_4 = arith.constant 0 : index
    %c0_5 = arith.constant 0 : index
    %3 = vector.load %arg2[%c0_3, %c0_4, %c0_5] : memref<8x8x128xbf16, #tpu.memory_space<vmem>>, vector<1x8x128xbf16>
    %4 = vector.shape_cast %3 : vector<1x8x128xbf16> to vector<8x128xbf16>
    %cst = arith.constant dense<0.000000e+00> : vector<256x128xf32>
    %5 = tpu.matmul %2, %4, %cst {dimension_numbers = #tpu.dot_dimension_numbers<[1], [0], [0], [1], [0, 0, 1, 1], [], []>} : vector<256x8xbf16>, vector<8x128xbf16>, vector<256x128xf32> -> vector<256x128xf32>
    %6 = vector.extract_strided_slice %0 {offsets = [0, 12], sizes = [256, 8], strides = [1, 1]} : vector<256x36xbf16> to vector<256x8xbf16>
    %c1 = arith.constant 1 : index
    %c0_6 = arith.constant 0 : index
    %c0_7 = arith.constant 0 : index
    %7 = vector.load %arg2[%c1, %c0_6, %c0_7] : memref<8x8x128xbf16, #tpu.memory_space<vmem>>, vector<1x8x128xbf16>
    %8 = vector.shape_cast %7 : vector<1x8x128xbf16> to vector<8x128xbf16>
    %cst_8 = arith.constant dense<0.000000e+00> : vector<256x128xf32>
    %9 = tpu.matmul %6, %8, %cst_8 {dimension_numbers = #tpu.dot_dimension_numbers<[1], [0], [0], [1], [0, 0, 1, 1], [], []>} : vector<256x8xbf16>, vector<8x128xbf16>, vector<256x128xf32> -> vector<256x128xf32>
    %10 = arith.addf %5, %9 : vector<256x128xf32>
    %11 = vector.broadcast %1 : vector<1x128xf32> to vector<256x128xf32>
    %12 = arith.addf %10, %11 : vector<256x128xf32>
    %cst_9 = arith.constant 0.000000e+00 : f32
    %13 = vector.broadcast %cst_9 : f32 to vector<256x128xf32>
    %14 = arith.maximumf %12, %13 : vector<256x128xf32>
    %15 = arith.truncf %14 : vector<256x128xf32> to vector<256x128xbf16>
    %c0_10 = arith.constant 0 : index
    %c0_11 = arith.constant 0 : index
    %16 = vector.load %arg4[%c0_10, %c0_11] : memref<256x512xbf16, #tpu.memory_space<vmem>>, vector<256x128xbf16>
    tpu.vector_store %arg4[%c0_10, %c0_11], %15 {strides = array<i32>} : memref<256x512xbf16, #tpu.memory_space<vmem>>, vector<256x128xbf16>,
    %17 = vector.extract_strided_slice %0 {offsets = [0, 4], sizes = [256, 8], strides = [1, 1]} : vector<256x36xbf16> to vector<256x8xbf16>
    %c2 = arith.constant 2 : index
    %c0_12 = arith.constant 0 : index
    %c0_13 = arith.constant 0 : index
    %18 = vector.load %arg2[%c2, %c0_12, %c0_13] : memref<8x8x128xbf16, #tpu.memory_space<vmem>>, vector<1x8x128xbf16>
    %19 = vector.shape_cast %18 : vector<1x8x128xbf16> to vector<8x128xbf16>
    %cst_14 = arith.constant dense<0.000000e+00> : vector<256x128xf32>
    %20 = tpu.matmul %17, %19, %cst_14 {dimension_numbers = #tpu.dot_dimension_numbers<[1], [0], [0], [1], [0, 0, 1, 1], [], []>} : vector<256x8xbf16>, vector<8x128xbf16>, vector<256x128xf32> -> vector<256x128xf32>
    %21 = vector.extract_strided_slice %0 {offsets = [0, 16], sizes = [256, 8], strides = [1, 1]} : vector<256x36xbf16> to vector<256x8xbf16>
    %c3 = arith.constant 3 : index
    %c0_15 = arith.constant 0 : index
    %c0_16 = arith.constant 0 : index
    %22 = vector.load %arg2[%c3, %c0_15, %c0_16] : memref<8x8x128xbf16, #tpu.memory_space<vmem>>, vector<1x8x128xbf16>
    %23 = vector.shape_cast %22 : vector<1x8x128xbf16> to vector<8x128xbf16>
    %cst_17 = arith.constant dense<0.000000e+00> : vector<256x128xf32>
    %24 = tpu.matmul %21, %23, %cst_17 {dimension_numbers = #tpu.dot_dimension_numbers<[1], [0], [0], [1], [0, 0, 1, 1], [], []>} : vector<256x8xbf16>, vector<8x128xbf16>, vector<256x128xf32> -> vector<256x128xf32>
    %25 = arith.addf %20, %24 : vector<256x128xf32>
    %26 = vector.broadcast %1 : vector<1x128xf32> to vector<256x128xf32>
    %27 = arith.addf %25, %26 : vector<256x128xf32>
    %cst_18 = arith.constant 0.000000e+00 : f32
    %28 = vector.broadcast %cst_18 : f32 to vector<256x128xf32>
    %29 = arith.maximumf %27, %28 : vector<256x128xf32>
    %30 = arith.truncf %29 : vector<256x128xf32> to vector<256x128xbf16>
    %c0_19 = arith.constant 0 : index
    %c128 = arith.constant 128 : index
    %31 = vector.load %arg4[%c0_19, %c128] : memref<256x512xbf16, #tpu.memory_space<vmem>>, vector<256x128xbf16>
    tpu.vector_store %arg4[%c0_19, %c128], %30 {strides = array<i32>} : memref<256x512xbf16, #tpu.memory_space<vmem>>, vector<256x128xbf16>,
    %32 = vector.extract_strided_slice %0 {offsets = [0, 12], sizes = [256, 8], strides = [1, 1]} : vector<256x36xbf16> to vector<256x8xbf16>
    %c4 = arith.constant 4 : index
    %c0_20 = arith.constant 0 : index
    %c0_21 = arith.constant 0 : index
    %33 = vector.load %arg2[%c4, %c0_20, %c0_21] : memref<8x8x128xbf16, #tpu.memory_space<vmem>>, vector<1x8x128xbf16>
    %34 = vector.shape_cast %33 : vector<1x8x128xbf16> to vector<8x128xbf16>
    %cst_22 = arith.constant dense<0.000000e+00> : vector<256x128xf32>
    %35 = tpu.matmul %32, %34, %cst_22 {dimension_numbers = #tpu.dot_dimension_numbers<[1], [0], [0], [1], [0, 0, 1, 1], [], []>} : vector<256x8xbf16>, vector<8x128xbf16>, vector<256x128xf32> -> vector<256x128xf32>
    %36 = vector.extract_strided_slice %0 {offsets = [0, 24], sizes = [256, 8], strides = [1, 1]} : vector<256x36xbf16> to vector<256x8xbf16>
    %c5 = arith.constant 5 : index
    %c0_23 = arith.constant 0 : index
    %c0_24 = arith.constant 0 : index
    %37 = vector.load %arg2[%c5, %c0_23, %c0_24] : memref<8x8x128xbf16, #tpu.memory_space<vmem>>, vector<1x8x128xbf16>
    %38 = vector.shape_cast %37 : vector<1x8x128xbf16> to vector<8x128xbf16>
    %cst_25 = arith.constant dense<0.000000e+00> : vector<256x128xf32>
    %39 = tpu.matmul %36, %38, %cst_25 {dimension_numbers = #tpu.dot_dimension_numbers<[1], [0], [0], [1], [0, 0, 1, 1], [], []>} : vector<256x8xbf16>, vector<8x128xbf16>, vector<256x128xf32> -> vector<256x128xf32>
    %40 = arith.addf %35, %39 : vector<256x128xf32>
    %41 = vector.broadcast %1 : vector<1x128xf32> to vector<256x128xf32>
    %42 = arith.addf %40, %41 : vector<256x128xf32>
    %cst_26 = arith.constant 0.000000e+00 : f32
    %43 = vector.broadcast %cst_26 : f32 to vector<256x128xf32>
    %44 = arith.maximumf %42, %43 : vector<256x128xf32>
    %45 = arith.truncf %44 : vector<256x128xf32> to vector<256x128xbf16>
    %c0_27 = arith.constant 0 : index
    %c256 = arith.constant 256 : index
    %46 = vector.load %arg4[%c0_27, %c256] : memref<256x512xbf16, #tpu.memory_space<vmem>>, vector<256x128xbf16>
    tpu.vector_store %arg4[%c0_27, %c256], %45 {strides = array<i32>} : memref<256x512xbf16, #tpu.memory_space<vmem>>, vector<256x128xbf16>,
    %47 = vector.extract_strided_slice %0 {offsets = [0, 16], sizes = [256, 8], strides = [1, 1]} : vector<256x36xbf16> to vector<256x8xbf16>
    %c6 = arith.constant 6 : index
    %c0_28 = arith.constant 0 : index
    %c0_29 = arith.constant 0 : index
    %48 = vector.load %arg2[%c6, %c0_28, %c0_29] : memref<8x8x128xbf16, #tpu.memory_space<vmem>>, vector<1x8x128xbf16>
    %49 = vector.shape_cast %48 : vector<1x8x128xbf16> to vector<8x128xbf16>
    %cst_30 = arith.constant dense<0.000000e+00> : vector<256x128xf32>
    %50 = tpu.matmul %47, %49, %cst_30 {dimension_numbers = #tpu.dot_dimension_numbers<[1], [0], [0], [1], [0, 0, 1, 1], [], []>} : vector<256x8xbf16>, vector<8x128xbf16>, vector<256x128xf32> -> vector<256x128xf32>
    %51 = vector.extract_strided_slice %0 {offsets = [0, 28], sizes = [256, 8], strides = [1, 1]} : vector<256x36xbf16> to vector<256x8xbf16>
    %c7 = arith.constant 7 : index
    %c0_31 = arith.constant 0 : index
    %c0_32 = arith.constant 0 : index
    %52 = vector.load %arg2[%c7, %c0_31, %c0_32] : memref<8x8x128xbf16, #tpu.memory_space<vmem>>, vector<1x8x128xbf16>
    %53 = vector.shape_cast %52 : vector<1x8x128xbf16> to vector<8x128xbf16>
    %cst_33 = arith.constant dense<0.000000e+00> : vector<256x128xf32>
    %54 = tpu.matmul %51, %53, %cst_33 {dimension_numbers = #tpu.dot_dimension_numbers<[1], [0], [0], [1], [0, 0, 1, 1], [], []>} : vector<256x8xbf16>, vector<8x128xbf16>, vector<256x128xf32> -> vector<256x128xf32>
    %55 = arith.addf %50, %54 : vector<256x128xf32>
    %56 = vector.broadcast %1 : vector<1x128xf32> to vector<256x128xf32>
    %57 = arith.addf %55, %56 : vector<256x128xf32>
    %cst_34 = arith.constant 0.000000e+00 : f32
    %58 = vector.broadcast %cst_34 : f32 to vector<256x128xf32>
    %59 = arith.maximumf %57, %58 : vector<256x128xf32>
    %60 = arith.truncf %59 : vector<256x128xf32> to vector<256x128xbf16>
    %c0_35 = arith.constant 0 : index
    %c384 = arith.constant 384 : index
    %61 = vector.load %arg4[%c0_35, %c384] : memref<256x512xbf16, #tpu.memory_space<vmem>>, vector<256x128xbf16>
    tpu.vector_store %arg4[%c0_35, %c384], %60 {strides = array<i32>} : memref<256x512xbf16, #tpu.memory_space<vmem>>, vector<256x128xbf16>,
    return
  }
  func.func @transform_0(%arg0: i32) -> (i32, i32) {
    %c0_i32 = arith.constant 0 : i32
    %c0_i32_0 = arith.constant 0 : i32
    return %arg0, %c0_i32 : i32, i32
  }
  func.func @transform_1(%arg0: i32) -> (i32, i32, i32) {
    %c0_i32 = arith.constant 0 : i32
    %c0_i32_0 = arith.constant 0 : i32
    %c0_i32_1 = arith.constant 0 : i32
    %c0_i32_2 = arith.constant 0 : i32
    return %c0_i32, %c0_i32_0, %c0_i32_1 : i32, i32, i32
  }
  func.func @transform_2(%arg0: i32) -> (i32, i32) {
    %c0_i32 = arith.constant 0 : i32
    %c0_i32_0 = arith.constant 0 : i32
    %c0_i32_1 = arith.constant 0 : i32
    return %c0_i32, %c0_i32_0 : i32, i32
  }
  func.func @transform_3(%arg0: i32) -> (i32, i32) {
    %c0_i32 = arith.constant 0 : i32
    %c0_i32_0 = arith.constant 0 : i32
    return %arg0, %c0_i32 : i32, i32
  }
}

</mosaic_0001>

<bundles_post_ra>
// kernel: up_conv_forward.1
= control target key start
LH: loop header
LB: loop body
LE: loop exit
PB: predicated region body
PF: predicated region fallthrough
CT: control target
= control target key end

     0   :  { %s3927_s12 = smov 0   ;;  %s5095_s0 = inlined_call_operand.vmem [shape: bf16[512,36], index: 0, kind: input, shape index: {}]   ;;  %s5096_s1 = inlined_call_operand.vmem [shape: bf16[8,8,128], index: 1, kind: input, shape index: {}]   ;;  %s5097_s2 = inlined_call_operand.vmem [shape: f32[1,128], index: 2, kind: input, shape index: {}]   ;;  %s5098_s3 = inlined_call_operand.vmem [shape: bf16[512,512], index: 3, kind: output, shape index: {}]  }
   0x1 LB: > { %s3027_s13 = sadd.s32 4294967295, %s3900_s12   ;;  %p3031_p0 = scmp.ge.s32.totalorder %s3900_s12, 1  ;;  %s3900_s12 = sphi %s3927_s12, %s13_s12  }
   0x2   : > { %p138_p1 = scmp.lt.s32.totalorder %s3900_s12, 3 }
   0x4   : > { %p139_p2 = pnand %p3031_p0, %p138_p1 }
   0x5   : > { %s3032_s14 = sshll.u32 (!%p139_p2), %s3027_s13, 5  ;;  %s3902_s27 = smov (!%p139_p2), 116  }
   0x6   : > { %142 = sbr.rel (%p139_p2) target bundleno = 591 (0x24f), region = 32  ;;  %p164_p3 = scmp.lt.s32.totalorder (!%p139_p2), %s3032_s14, 63 }
   0x7   : > { %s3903_s28 = smov (!%p139_p2), 124   ;;  %s3904_s29 = smov (!%p139_p2), 112  }
   0x8   : > { %s3905_s5 = smov (!%p139_p2), 104   ;;  %s3906_s8 = smov (!%p139_p2), 100  }
   0xb   : > { %v210_v0 = vld [vmem:[%s5096_s1] sm:$0xf]  ;;  %vm374_vm0 = vcmask 1043456   ;;  %v3037_v2 = vld [vmem:[%s5096_s1 + $0x4] sm:$0xf]  ;;  %s5100_s14 = smov (!%p164_p3, %s3032_s14), 63 }
   0xc   : > { %3857 = vmatprep.subr.msk.bf16.mxu1 %vm374_vm0, %v210_v0  ;;  %v588_v1 = vsel %vm374_vm0, %v210_v0, 0  ;;  %3856 = vmatprep.subr.msk.bf16.mxu0 %vm374_vm0, %v3037_v2  ;;  %v376_v3 = vsel %vm374_vm0, %v3037_v2, 0  ;;  %v3948_v4 = vld [vmem:[%s5096_s1 + $0xc] sm:$0xf]  ;;  %v3119_v5 = vld [vmem:[%s5096_s1 + $0x8] sm:$0xf] }
   0xd   : > { %3619 = vmatpush3.bf16.msra.mxu1 %v588_v1  ;;  %3585 = vmatpush3.bf16.msra.mxu0 %v376_v3  ;;  %s3033_s23 = sshll.u32 %s5100_s14, 2  ;;  %vm325_vm1 = vcmask 64512   ;;  %v1310_v10 = vsel %vm374_vm0, %v3119_v5, 0  ;;  %v4102_v23 = vld [vmem:[%s5096_s1 + $0x10] sm:$0xf]  ;;  %v1066_v27 = vsel %vm374_vm0, %v3948_v4, 0 }
   0xe   : > { %3859 = vmatprep.subr.msk.bf16.mxu1 %vm374_vm0, %v3119_v5  ;;  %3858 = vmatprep.subr.msk.bf16.mxu0 %vm374_vm0, %v3948_v4  ;;  %s3962_s26 = scalar_lea.vmem %s5095_s0, %s3033_s23  ;;  %v4175_v29 = vld [vmem:[%s5096_s1 + $0x14] sm:$0xf]  ;;  %v1946_v44 = vsel %vm374_vm0, %v4102_v23, 0  ;;  %v4258_v47 = vld [vmem:[%s5096_s1 + $0x18] sm:$0xf]  ;;  %s3319_s17 = sshll.u32 %s5100_s14, 4 }
   0xf   : > { %v3965_v6 = vld [vmem:[%s3962_s26 + $0x10] sm:$0xff]   ;;  %v3968_v7 = vld [vmem:[%s3962_s26] sm:$0xff]   ;;  %v3973_v8 = vld [vmem:[%s3962_s26 + $0x18] sm:$0xff]   ;;  %v1782_v61 = vsel %vm374_vm0, %v4175_v29, 0  ;;  %s4506_s20 = scalar_lea.vmem %s5098_s3, %s3319_s17 }
  0x10   : > { %297 = vrot.lane.b32.xlu1 %v3965_v6, %s3902_s27  ;;  %293 = vrot.lane.b32.xlu0 %v3968_v7, %s3902_s27  ;;  %v3978_v9 = vld [vmem:[%s3962_s26 + $0x8] sm:$0xff]   ;;  %v3995_v12 = vld [vmem:[%s3962_s26 + $0x20] sm:$0xff]  }
  0x11   : > { %3620 = vmatprep.mubr.msk.bf16.mxu1 %vm325_vm1, %v3968_v7  ;;  %v3988_v11 = vld [vmem:[%s3962_s26 + $0x28] sm:$0xff]   ;;  %v4000_v13 = vld [vmem:[%s3962_s26 + $0x38] sm:$0xff]   ;;  %v4005_v14 = vld [vmem:[%s3962_s26 + $0x30] sm:$0xff]  }
  0x12   : > { %3621 = vmatmul.mubr.msk.bf16.vlgmr.msra.gmra.mxu1 %vm325_vm1, %v3978_v9  ;;  %v4012_v15 = vld [vmem:[%s3962_s26 + $0x48] sm:$0xff]   ;;  %v4019_v16 = vld [vmem:[%s3962_s26 + $0x40] sm:$0xff]   ;;  %v4024_v17 = vld [vmem:[%s3962_s26 + $0x58] sm:$0xff]  }
  0x13   : > { %3624 = vmatprep.mubr.msk.bf16.mxu1 %vm325_vm1, %v3965_v6  ;;  %3687 = vmatpush3.bf16.msra.mxu1 %v1310_v10  ;;  %v4029_v18 = vld [vmem:[%s3962_s26 + $0x50] sm:$0xff]   ;;  %v4036_v19 = vld [vmem:[%s3962_s26 + $0x68] sm:$0xff]   ;;  %v4043_v20 = vld [vmem:[%s3962_s26 + $0x60] sm:$0xff]   ;;  %v2582_v10 = vsel %vm374_vm0, %v4258_v47, 0 }
  0x14   : > { %299 = vrot.lane.b32.xlu1 %v3973_v8, %s3902_s27  ;;  %295 = vrot.lane.b32.xlu0 %v3978_v9, %s3902_s27  ;;  %v4048_v21 = vld [vmem:[%s3962_s26 + $0x78] sm:$0xff]   ;;  %v4053_v22 = vld [vmem:[%s3962_s26 + $0x70] sm:$0xff]  }
  0x15   : > { %3861 = vmatprep.subr.msk.bf16.mxu1 %vm374_vm0, %v4102_v23  ;;  %v3252_v62 = vld [vmem:[%s5096_s1 + $0x1c] sm:$0xf] }
  0x18   : > { %303 = vrot.lane.b32.xlu1 %v3988_v11, %s3902_s27  ;;  %301 = vrot.lane.b32.xlu0 %v3995_v12, %s3902_s27 }
  0x1a   : > { %3625 = vmatmul.mubr.msk.bf16.gmra.mxu1 %vm325_vm1, %v3973_v8 }
  0x1b   : > { %3628 = vmatprep.mubr.msk.bf16.mxu1 %vm325_vm1, %v3995_v12 }
  0x1c   : > { %307 = vrot.lane.b32.xlu1 %v4000_v13, %s3902_s27  ;;  %305 = vrot.lane.b32.xlu0 %v4005_v14, %s3902_s27 }
  0x20   : > { %311 = vrot.lane.b32.xlu1 %v4012_v15, %s3902_s27  ;;  %309 = vrot.lane.b32.xlu0 %v4019_v16, %s3902_s27 }
  0x22   : > { %3629 = vmatmul.mubr.msk.bf16.gmra.mxu1 %vm325_vm1, %v3988_v11 }
  0x23   : > { %3632 = vmatprep.mubr.msk.bf16.mxu1 %vm325_vm1, %v4005_v14 }
  0x24   : > { %315 = vrot.lane.b32.xlu1 %v4024_v17, %s3902_s27  ;;  %313 = vrot.lane.b32.xlu0 %v4029_v18, %s3902_s27 }
  0x28   : > { %319 = vrot.lane.b32.xlu1 %v4036_v19, %s3902_s27  ;;  %317 = vrot.lane.b32.xlu0 %v4043_v20, %s3902_s27 }
  0x2a   : > { %3633 = vmatmul.mubr.msk.bf16.gmra.mxu1 %vm325_vm1, %v4000_v13 }
  0x2b   : > { %3636 = vmatprep.mubr.msk.bf16.mxu1 %vm325_vm1, %v4019_v16 }
  0x2c   : > { %323 = vrot.lane.b32.xlu1 %v4048_v21, %s3902_s27  ;;  %321 = vrot.lane.b32.xlu0 %v4053_v22, %s3902_s27 }
  0x30   : > { %1229 = vrot.lane.b32.xlu1 %v3968_v7, %s3903_s28  ;;  %985 = vrot.lane.b32.xlu0 %v3968_v7, %s3904_s29 }
  0x32   : > { %3637 = vmatmul.mubr.msk.bf16.gmra.mxu1 %vm325_vm1, %v4012_v15 }
  0x33   : > { %3640 = vmatprep.mubr.msk.bf16.mxu1 %vm325_vm1, %v4029_v18 }
  0x34   : > { %1231 = vrot.lane.b32.xlu1 %v3978_v9, %s3903_s28  ;;  %987 = vrot.lane.b32.xlu0 %v3978_v9, %s3904_s29 }
  0x38   : > { %1233 = vrot.lane.b32.xlu1 %v3965_v6, %s3903_s28  ;;  %989 = vrot.lane.b32.xlu0 %v3965_v6, %s3904_s29 }
  0x3a   : > { %3641 = vmatmul.mubr.msk.bf16.gmra.mxu1 %vm325_vm1, %v4024_v17 }
  0x3b   : > { %3644 = vmatprep.mubr.msk.bf16.mxu1 %vm325_vm1, %v4043_v20 }
  0x3c   : > { %1235 = vrot.lane.b32.xlu1 %v3973_v8, %s3903_s28  ;;  %991 = vrot.lane.b32.xlu0 %v3973_v8, %s3904_s29 }
  0x40   : > { %1237 = vrot.lane.b32.xlu1 %v3995_v12, %s3903_s28  ;;  %993 = vrot.lane.b32.xlu0 %v3995_v12, %s3904_s29 }
  0x42   : > { %3645 = vmatmul.mubr.msk.bf16.gmra.mxu1 %vm325_vm1, %v4036_v19 }
  0x43   : > { %3648 = vmatprep.mubr.msk.bf16.mxu1 %vm325_vm1, %v4053_v22 }
  0x44   : > { %1239 = vrot.lane.b32.xlu1 %v3988_v11, %s3903_s28  ;;  %995 = vrot.lane.b32.xlu0 %v3988_v11, %s3904_s29 }
  0x48   : > { %1241 = vrot.lane.b32.xlu1 %v4005_v14, %s3903_s28  ;;  %997 = vrot.lane.b32.xlu0 %v4005_v14, %s3904_s29 }
  0x4a   : > { %3649 = vmatmul.mubr.msk.bf16.gmra.mxu1 %vm325_vm1, %v4048_v21 }
  0x4c   : > { %1243 = vrot.lane.b32.xlu1 %v4000_v13, %s3903_s28  ;;  %999 = vrot.lane.b32.xlu0 %v4000_v13, %s3904_s29 }
  0x50   : > { %1245 = vrot.lane.b32.xlu1 %v4019_v16, %s3903_s28  ;;  %1001 = vrot.lane.b32.xlu0 %v4019_v16, %s3904_s29 }
  0x54   : > { %1247 = vrot.lane.b32.xlu1 %v4012_v15, %s3903_s28  ;;  %1003 = vrot.lane.b32.xlu0 %v4012_v15, %s3904_s29 }
  0x58   : > { %1249 = vrot.lane.b32.xlu1 %v4029_v18, %s3903_s28  ;;  %1005 = vrot.lane.b32.xlu0 %v4029_v18, %s3904_s29 }
  0x5c   : > { %1251 = vrot.lane.b32.xlu1 %v4024_v17, %s3903_s28  ;;  %1007 = vrot.lane.b32.xlu0 %v4024_v17, %s3904_s29 }
  0x60   : > { %1253 = vrot.lane.b32.xlu1 %v4043_v20, %s3903_s28  ;;  %1009 = vrot.lane.b32.xlu0 %v4043_v20, %s3904_s29 }
  0x64   : > { %1255 = vrot.lane.b32.xlu1 %v4036_v19, %s3903_s28  ;;  %1011 = vrot.lane.b32.xlu0 %v4036_v19, %s3904_s29 }
  0x68   : > { %1257 = vrot.lane.b32.xlu1 %v4053_v22, %s3903_s28  ;;  %1013 = vrot.lane.b32.xlu0 %v4053_v22, %s3904_s29 }
  0x6c   : > { %1259 = vrot.lane.b32.xlu1 %v4048_v21, %s3903_s28  ;;  %1015 = vrot.lane.b32.xlu0 %v4048_v21, %s3904_s29 }
  0x70   : > { %1703 = vrot.lane.b32.xlu1 %v3978_v9, %s3905_s5  ;;  %1701 = vrot.lane.b32.xlu0 %v3968_v7, %s3905_s5 }
  0x74   : > { %1707 = vrot.lane.b32.xlu1 %v3973_v8, %s3905_s5  ;;  %1705 = vrot.lane.b32.xlu0 %v3965_v6, %s3905_s5 }
  0x78   : > { %1711 = vrot.lane.b32.xlu1 %v3988_v11, %s3905_s5  ;;  %1709 = vrot.lane.b32.xlu0 %v3995_v12, %s3905_s5 }
  0x7c   : > { %1715 = vrot.lane.b32.xlu1 %v4000_v13, %s3905_s5  ;;  %1713 = vrot.lane.b32.xlu0 %v4005_v14, %s3905_s5 }
  0x80   : > { %1719 = vrot.lane.b32.xlu1 %v4012_v15, %s3905_s5  ;;  %1717 = vrot.lane.b32.xlu0 %v4019_v16, %s3905_s5 }
  0x82   : > { %v4158_v24 = vpop.permute.xlu1 %297  ;;  %v4160_v25 = vpop.permute.xlu0 %293 }
  0x83   : > { %3586 = vmatprep.mubr.msk.bf16.mxu0 %vm325_vm1, %v4160_v25 }
  0x84   : > { %1723 = vrot.lane.b32.xlu1 %v4024_v17, %s3905_s5  ;;  %1721 = vrot.lane.b32.xlu0 %v4029_v18, %s3905_s5 }
  0x86   : > { %v4166_v26 = vpop.permute.xlu1 %299  ;;  %v4170_v28 = vpop.permute.xlu0 %295 }
  0x87   : > { %3587 = vmatmul.mubr.msk.bf16.vlgmr.msra.gmra.mxu0 %vm325_vm1, %v4170_v28 }
  0x88   : > { %1727 = vrot.lane.b32.xlu1 %v4036_v19, %s3905_s5  ;;  %3653 = vmatpush3.bf16.msra.mxu0 %v1066_v27 }
  0x89   : > { %3590 = vmatprep.mubr.msk.bf16.mxu0 %vm325_vm1, %v4158_v24  ;;  %1725 = vrot.lane.b32.xlu0 %v4043_v20, %s3905_s5 }
  0x8a   : > { %v4182_v30 = vpop.permute.xlu1 %303  ;;  %3860 = vmatprep.subr.msk.bf16.mxu0 %vm374_vm0, %v4175_v29  ;;  %v4187_v31 = vpop.permute.xlu0 %301 }
  0x8c   : > { %1731 = vrot.lane.b32.xlu1 %v4048_v21, %s3905_s5 }
  0x8d   : > { %1729 = vrot.lane.b32.xlu0 %v4053_v22, %s3905_s5 }
  0x8e   : > { %v4190_v32 = vpop.permute.xlu1 %307  ;;  %v4193_v33 = vpop.permute.xlu0 %305 }
  0x8f   : > { %3591 = vmatmul.mubr.msk.bf16.gmra.mxu0 %vm325_vm1, %v4166_v26 }
  0x90   : > { %2339 = vrot.lane.b32.xlu1 %v3978_v9, %s3906_s8  ;;  %3594 = vmatprep.mubr.msk.bf16.mxu0 %vm325_vm1, %v4187_v31 }
  0x91   : > { %2337 = vrot.lane.b32.xlu0 %v3968_v7, %s3906_s8 }
  0x92   : > { %v4201_v34 = vpop.permute.xlu1 %311  ;;  %v4205_v35 = vpop.permute.xlu0 %309 }
  0x94   : > { %2343 = vrot.lane.b32.xlu1 %v3973_v8, %s3906_s8 }
  0x95   : > { %2341 = vrot.lane.b32.xlu0 %v3965_v6, %s3906_s8 }
  0x96   : > { %v4209_v36 = vpop.permute.xlu1 %315  ;;  %v4213_v37 = vpop.permute.xlu0 %313 }
  0x97   : > { %3595 = vmatmul.mubr.msk.bf16.gmra.mxu0 %vm325_vm1, %v4182_v30 }
  0x98   : > { %2347 = vrot.lane.b32.xlu1 %v3988_v11, %s3906_s8  ;;  %3598 = vmatprep.mubr.msk.bf16.mxu0 %vm325_vm1, %v4193_v33 }
  0x99   : > { %2345 = vrot.lane.b32.xlu0 %v3995_v12, %s3906_s8 }
  0x9a   : > { %v4221_v38 = vpop.permute.xlu1 %319  ;;  %v4225_v39 = vpop.permute.xlu0 %317 }
  0x9c   : > { %2351 = vrot.lane.b32.xlu1 %v4000_v13, %s3906_s8 }
  0x9d   : > { %2349 = vrot.lane.b32.xlu0 %v4005_v14, %s3906_s8 }
  0x9e   : > { %v4229_v40 = vpop.permute.xlu1 %323  ;;  %v4233_v41 = vpop.permute.xlu0 %321 }
  0x9f   : > { %3599 = vmatmul.mubr.msk.bf16.gmra.mxu0 %vm325_vm1, %v4190_v32 }
  0xa0   : > { %2355 = vrot.lane.b32.xlu1 %v4012_v15, %s3906_s8  ;;  %3602 = vmatprep.mubr.msk.bf16.mxu0 %vm325_vm1, %v4205_v35 }
  0xa1   : > { %2353 = vrot.lane.b32.xlu0 %v4019_v16, %s3906_s8 }
  0xa2   : > { %v1230_v42 = vpop.permute.xlu1 %1229  ;;  %v4244_v43 = vpop.permute.xlu0 %985 }
  0xa3   : > { %3688 = vmatprep.mubr.msk.bf16.mxu1 %vm325_vm1, %v1230_v42 }
  0xa4   : > { %2359 = vrot.lane.b32.xlu1 %v4024_v17, %s3906_s8 }
  0xa5   : > { %2357 = vrot.lane.b32.xlu0 %v4029_v18, %s3906_s8 }
  0xa6   : > { %v1232_v45 = vpop.permute.xlu1 %1231  ;;  %v4253_v46 = vpop.permute.xlu0 %987 }
  0xa7   : > { %3689 = vmatmul.mubr.msk.bf16.vlgmr.msra.gmra.mxu1 %vm325_vm1, %v1232_v45  ;;  %3603 = vmatmul.mubr.msk.bf16.gmra.mxu0 %vm325_vm1, %v4201_v34 }
  0xa8   : > { %3755 = vmatpush3.bf16.msra.mxu1 %v1946_v44  ;;  %3606 = vmatprep.mubr.msk.bf16.mxu0 %vm325_vm1, %v4213_v37 }
  0xa9   : > { %2363 = vrot.lane.b32.xlu1 %v4036_v19, %s3906_s8  ;;  %2361 = vrot.lane.b32.xlu0 %v4043_v20, %s3906_s8 }
  0xaa   : > { %v1234_v48 = vpop.permute.xlu1 %1233  ;;  %3863 = vmatprep.subr.msk.bf16.mxu1 %vm374_vm0, %v4258_v47  ;;  %v4271_v49 = vpop.permute.xlu0 %989 }
  0xab   : > { %3692 = vmatprep.mubr.msk.bf16.mxu1 %vm325_vm1, %v1234_v48 }
  0xad   : > { %2367 = vrot.lane.b32.xlu1 %v4048_v21, %s3906_s8  ;;  %2365 = vrot.lane.b32.xlu0 %v4053_v22, %s3906_s8 }
  0xae   : > { %v1236_v50 = vpop.permute.xlu1 %1235  ;;  %v4282_v52 = vpop.permute.xlu0 %991 }
  0xaf   : > { %3693 = vmatmul.mubr.msk.bf16.gmra.mxu1 %vm325_vm1, %v1236_v50  ;;  %3607 = vmatmul.mubr.msk.bf16.gmra.mxu0 %vm325_vm1, %v4209_v36 }
  0xb0   : > { %3610 = vmatprep.mubr.msk.bf16.mxu0 %vm325_vm1, %v4225_v39 }
  0xb2   : > { %v1238_v51 = vpop.permute.xlu1 %1237  ;;  %v4288_v54 = vpop.permute.xlu0 %993 }
  0xb3   : > { %3696 = vmatprep.mubr.msk.bf16.mxu1 %vm325_vm1, %v1238_v51 }
  0xb6   : > { %v1240_v53 = vpop.permute.xlu1 %1239  ;;  %v4293_v57 = vpop.permute.xlu0 %995 }
  0xb7   : > { %3697 = vmatmul.mubr.msk.bf16.gmra.mxu1 %vm325_vm1, %v1240_v53  ;;  %3611 = vmatmul.mubr.msk.bf16.gmra.mxu0 %vm325_vm1, %v4221_v38 }
  0xb8   : > { %3614 = vmatprep.mubr.msk.bf16.mxu0 %vm325_vm1, %v4233_v41 }
  0xba   : > { %v1242_v55 = vpop.permute.xlu1 %1241  ;;  %v4301_v59 = vpop.permute.xlu0 %997 }
  0xbb   : > { %3700 = vmatprep.mubr.msk.bf16.mxu1 %vm325_vm1, %v1242_v55 }
  0xbe   : > { %v1244_v56 = vpop.permute.xlu1 %1243  ;;  %v4313_v0 = vpop.permute.xlu0 %999 }
  0xbf   : > { %3701 = vmatmul.mubr.msk.bf16.gmra.mxu1 %vm325_vm1, %v1244_v56  ;;  %3615 = vmatmul.mubr.msk.bf16.gmra.mxu0 %vm325_vm1, %v4229_v40 }
  0xc0   : > { %3654 = vmatprep.mubr.msk.bf16.mxu0 %vm325_vm1, %v4244_v43 }
  0xc2   : > { %v1246_v58 = vpop.permute.xlu1 %1245  ;;  %v4320_v2 = vpop.permute.xlu0 %1001 }
  0xc3   : > { %3704 = vmatprep.mubr.msk.bf16.mxu1 %vm325_vm1, %v1246_v58 }
  0xc6   : > { %v1248_v60 = vpop.permute.xlu1 %1247  ;;  %v4325_v5 = vpop.permute.xlu0 %1003 }
  0xc7   : > { %3705 = vmatmul.mubr.msk.bf16.gmra.mxu1 %vm325_vm1, %v1248_v60  ;;  %3655 = vmatmul.mubr.msk.bf16.vlgmr.msra.gmra.mxu0 %vm325_vm1, %v4253_v46  ;;  %v4489_v60 = vld [vmem:[%s5097_s2] ss:$0 sm:$0xff] }
  0xc8   : > { %3721 = vmatpush3.bf16.msra.mxu0 %v1782_v61  ;;  %3658 = vmatprep.mubr.msk.bf16.mxu0 %vm325_vm1, %v4271_v49 }
  0xc9   : > { %3862 = vmatprep.subr.msk.bf16.mxu0 %vm374_vm0, %v3252_v62 }
  0xca   : > { %v1250_v63 = vpop.permute.xlu1 %1249  ;;  %v4333_v7 = vpop.permute.xlu0 %1005 }
  0xcb   : > { %3708 = vmatprep.mubr.msk.bf16.mxu1 %vm325_vm1, %v1250_v63 }
  0xce   : > { %v1252_v1 = vpop.permute.xlu1 %1251  ;;  %v4342_v9 = vpop.permute.xlu0 %1007 }
  0xcf   : > { %3709 = vmatmul.mubr.msk.bf16.gmra.mxu1 %vm325_vm1, %v1252_v1  ;;  %3659 = vmatmul.mubr.msk.bf16.gmra.mxu0 %vm325_vm1, %v4282_v52 }
  0xd0   : > { %3662 = vmatprep.mubr.msk.bf16.mxu0 %vm325_vm1, %v4288_v54 }
  0xd2   : > { %v1254_v3 = vpop.permute.xlu1 %1253  ;;  %v4348_v11 = vpop.f32.mrf.mxu1 }
  0xd3   : > { %3712 = vmatprep.mubr.msk.bf16.mxu1 %vm325_vm1, %v1254_v3  ;;  %v4354_v12 = vpop.permute.xlu0 %1009 }
  0xd4   : > { %v4358_v13 = vpop.f32.mrf.mxu1 }
  0xd6   : > { %v1256_v4 = vpop.permute.xlu1 %1255  ;;  %v4364_v15 = vpop.f32.mrf.mxu1 }
  0xd7   : > { %3713 = vmatmul.mubr.msk.bf16.gmra.mxu1 %vm325_vm1, %v1256_v4  ;;  %3663 = vmatmul.mubr.msk.bf16.gmra.mxu0 %vm325_vm1, %v4293_v57  ;;  %v4360_v14 = vpop.permute.xlu0 %1011 }
  0xd8   : > { %3666 = vmatprep.mubr.msk.bf16.mxu0 %vm325_vm1, %v4301_v59  ;;  %v4372_v16 = vpop.f32.mrf.mxu1 }
  0xda   : > { %v1258_v6 = vpop.permute.xlu1 %1257  ;;  %v4378_v18 = vpop.f32.mrf.mxu1 }
  0xdb   : > { %3716 = vmatprep.mubr.msk.bf16.mxu1 %vm325_vm1, %v1258_v6  ;;  %v4374_v17 = vpop.permute.xlu0 %1013 }
  0xdc   : > { %v4388_v20 = vpop.f32.mrf.mxu1 }
  0xde   : > { %v1260_v8 = vpop.permute.xlu1 %1259  ;;  %v4392_v22 = vpop.f32.mrf.mxu1 }
  0xdf   : > { %3717 = vmatmul.mubr.msk.bf16.gmra.mxu1 %vm325_vm1, %v1260_v8  ;;  %3667 = vmatmul.mubr.msk.bf16.gmra.mxu0 %vm325_vm1, %v4313_v0  ;;  %v4386_v19 = vpop.permute.xlu0 %1015 }
  0xe0   : > { %3756 = vmatprep.mubr.msk.bf16.mxu1 %vm325_vm1, %v4160_v25  ;;  %3670 = vmatprep.mubr.msk.bf16.mxu0 %vm325_vm1, %v4320_v2  ;;  %v4399_v23 = vpop.f32.mrf.mxu1  ;;  %v2418_v25 = vsel %vm374_vm0, %v3252_v62, 0 }
  0xe2   : > { %v4404_v27 = vpop.f32.mrf.mxu1 }
  0xe3   : > { %v1702_v21 = vpop.permute.xlu0 %1701 }
  0xe7   : > { %3757 = vmatmul.mubr.msk.bf16.vlgmr.msra.gmra.mxu1 %vm325_vm1, %v4170_v28  ;;  %3671 = vmatmul.mubr.msk.bf16.gmra.mxu0 %vm325_vm1, %v4325_v5  ;;  %v4410_v28 = vpop.f32.mrf.mxu1 }
  0xe8   : > { %3760 = vmatprep.mubr.msk.bf16.mxu1 %vm325_vm1, %v4158_v24  ;;  %3674 = vmatprep.mubr.msk.bf16.mxu0 %vm325_vm1, %v4333_v7  ;;  %v1704_v24 = vpop.permute.xlu1 %1703 }
  0xe9   : > { %3823 = vmatpush3.bf16.msra.mxu1 %v2582_v10 }
  0xec   : > { %v1708_v29 = vpop.permute.xlu1 %1707 }
  0xef   : > { %3761 = vmatmul.mubr.msk.bf16.gmra.mxu1 %vm325_vm1, %v4166_v26  ;;  %3675 = vmatmul.mubr.msk.bf16.gmra.mxu0 %vm325_vm1, %v4342_v9  ;;  %v1706_v26 = vpop.permute.xlu0 %1705 }
  0xf0   : > { %3764 = vmatprep.mubr.msk.bf16.mxu1 %vm325_vm1, %v4187_v31  ;;  %3678 = vmatprep.mubr.msk.bf16.mxu0 %vm325_vm1, %v4354_v12  ;;  %v4414_v31 = vpop.f32.mrf.mxu1 }
  0xf7   : > { %3765 = vmatmul.mubr.msk.bf16.gmra.mxu1 %vm325_vm1, %v4182_v30  ;;  %3679 = vmatmul.mubr.msk.bf16.gmra.mxu0 %vm325_vm1, %v4360_v14  ;;  %v1710_v30 = vpop.permute.xlu0 %1709 }
  0xf8   : > { %3768 = vmatprep.mubr.msk.bf16.mxu1 %vm325_vm1, %v4193_v33  ;;  %3682 = vmatprep.mubr.msk.bf16.mxu0 %vm325_vm1, %v4374_v17  ;;  %v1712_v33 = vpop.permute.xlu1 %1711 }
  0xff   : > { %3769 = vmatmul.mubr.msk.bf16.gmra.mxu1 %vm325_vm1, %v4190_v32  ;;  %3683 = vmatmul.mubr.msk.bf16.gmra.mxu0 %vm325_vm1, %v4386_v19  ;;  %v4420_v32 = vpop.f32.mrf.mxu1 }
 0x100   : > { %3772 = vmatprep.mubr.msk.bf16.mxu1 %vm325_vm1, %v4205_v35  ;;  %3722 = vmatprep.mubr.msk.bf16.mxu0 %vm325_vm1, %v1702_v21 }
 0x101   : > { %v4424_v35 = vpop.f32.mrf.mxu1 }
 0x107   : > { %3773 = vmatmul.mubr.msk.bf16.gmra.mxu1 %vm325_vm1, %v4201_v34  ;;  %3723 = vmatmul.mubr.msk.bf16.vlgmr.msra.gmra.mxu0 %vm325_vm1, %v1704_v24  ;;  %v1714_v34 = vpop.permute.xlu0 %1713 }
 0x108   : > { %3776 = vmatprep.mubr.msk.bf16.mxu1 %vm325_vm1, %v4213_v37  ;;  %3789 = vmatpush3.bf16.msra.mxu0 %v2418_v25  ;;  %v1716_v37 = vpop.permute.xlu1 %1715 }
 0x109   : > { %3726 = vmatprep.mubr.msk.bf16.mxu0 %vm325_vm1, %v1706_v26 }
 0x10f   : > { %3777 = vmatmul.mubr.msk.bf16.gmra.mxu1 %vm325_vm1, %v4209_v36  ;;  %3727 = vmatmul.mubr.msk.bf16.gmra.mxu0 %vm325_vm1, %v1708_v29  ;;  %v4430_v36 = vpop.f32.mrf.mxu1 }
 0x110   : > { %3780 = vmatprep.mubr.msk.bf16.mxu1 %vm325_vm1, %v4225_v39  ;;  %3730 = vmatprep.mubr.msk.bf16.mxu0 %vm325_vm1, %v1710_v30  ;;  %v1718_v39 = vpop.permute.xlu0 %1717 }
 0x111   : > { %v4434_v42 = vpop.f32.mrf.mxu1 }
 0x114   : > { %v1722_v44 = vpop.permute.xlu0 %1721 }
 0x117   : > { %3781 = vmatmul.mubr.msk.bf16.gmra.mxu1 %vm325_vm1, %v4221_v38  ;;  %3731 = vmatmul.mubr.msk.bf16.gmra.mxu0 %vm325_vm1, %v1712_v33  ;;  %v4440_v38 = vpop.f32.mrf.mxu1 }
 0x118   : > { %3784 = vmatprep.mubr.msk.bf16.mxu1 %vm325_vm1, %v4233_v41  ;;  %3734 = vmatprep.mubr.msk.bf16.mxu0 %vm325_vm1, %v1714_v34  ;;  %v1720_v41 = vpop.permute.xlu1 %1719  ;;  %v1726_v47 = vpop.permute.xlu0 %1725 }
 0x119   : > { %v4444_v45 = vpop.f32.mrf.mxu1 }
 0x11c   : > { %v1730_v50 = vpop.permute.xlu0 %1729 }
 0x11f   : > { %3785 = vmatmul.mubr.msk.bf16.gmra.mxu1 %vm325_vm1, %v4229_v40  ;;  %3735 = vmatmul.mubr.msk.bf16.gmra.mxu0 %vm325_vm1, %v1716_v37  ;;  %v4450_v40 = vpop.f32.mrf.mxu1 }
 0x120   : > { %3824 = vmatprep.mubr.msk.bf16.mxu1 %vm325_vm1, %v4244_v43  ;;  %3738 = vmatprep.mubr.msk.bf16.mxu0 %vm325_vm1, %v1718_v39  ;;  %v1724_v43 = vpop.permute.xlu1 %1723 }
 0x121   : > { %v4454_v48 = vpop.f32.mrf.mxu1 }
 0x127   : > { %3825 = vmatmul.mubr.msk.bf16.vlgmr.msra.gmra.mxu1 %vm325_vm1, %v4253_v46  ;;  %3739 = vmatmul.mubr.msk.bf16.gmra.mxu0 %vm325_vm1, %v1720_v41  ;;  %v4460_v46 = vpop.f32.mrf.mxu1 }
 0x128   : > { %3828 = vmatprep.mubr.msk.bf16.mxu1 %vm325_vm1, %v4271_v49  ;;  %3742 = vmatprep.mubr.msk.bf16.mxu0 %vm325_vm1, %v1722_v44  ;;  %v1728_v49 = vpop.permute.xlu1 %1727 }
 0x129   : > { %v4464_v51 = vpop.f32.mrf.mxu1 }
 0x12c   : > { %v1732_v53 = vpop.permute.xlu1 %1731 }
 0x12f   : > { %3829 = vmatmul.mubr.msk.bf16.gmra.mxu1 %vm325_vm1, %v4282_v52  ;;  %3743 = vmatmul.mubr.msk.bf16.gmra.mxu0 %vm325_vm1, %v1724_v43  ;;  %v4470_v52 = vpop.f32.mrf.mxu1 }
 0x130   : > { %3832 = vmatprep.mubr.msk.bf16.mxu1 %vm325_vm1, %v4288_v54  ;;  %3746 = vmatprep.mubr.msk.bf16.mxu0 %vm325_vm1, %v1726_v47  ;;  %v2338_v54 = vpop.permute.xlu0 %2337 }
 0x131   : > { %v4474_v55 = vpop.f32.mrf.mxu1 }
 0x133   : > { %v4480_v56 = vpop.f32.mrf.mxu1 }
 0x134   : > { %v2342_v58 = vpop.permute.xlu0 %2341 }
 0x137   : > { %3833 = vmatmul.mubr.msk.bf16.gmra.mxu1 %vm325_vm1, %v4293_v57  ;;  %3747 = vmatmul.mubr.msk.bf16.gmra.mxu0 %vm325_vm1, %v1728_v49  ;;  %v2340_v57 = vpop.permute.xlu1 %2339 }
 0x138   : > { %3836 = vmatprep.mubr.msk.bf16.mxu1 %vm325_vm1, %v4301_v59  ;;  %3750 = vmatprep.mubr.msk.bf16.mxu0 %vm325_vm1, %v1730_v50  ;;  %v4484_v59 = vpop.f32.mrf.mxu1  ;;  %v2346_v10 = vpop.permute.xlu0 %2345 }
 0x13b   : > { %v2344_v8 = vpop.permute.xlu1 %2343 }
 0x13f   : > { %3837 = vmatmul.mubr.msk.bf16.gmra.mxu1 %vm325_vm1, %v4313_v0  ;;  %3751 = vmatmul.mubr.msk.bf16.gmra.mxu0 %vm325_vm1, %v1732_v53  ;;  %v2348_v49 = vpop.permute.xlu1 %2347  ;;  %v2350_v53 = vpop.permute.xlu0 %2349 }
 0x140   : > { %3840 = vmatprep.mubr.msk.bf16.mxu1 %vm325_vm1, %v4320_v2  ;;  %3790 = vmatprep.mubr.msk.bf16.mxu0 %vm325_vm1, %v2338_v54  ;;  %v4499_v2 = vpop.f32.mrf.mxu1 }
 0x147   : > { %3841 = vmatmul.mubr.msk.bf16.gmra.mxu1 %vm325_vm1, %v4325_v5  ;;  %v3588_v61 = vpop.f32.mrf.mxu0  ;;  %3791 = vmatmul.mubr.msk.bf16.vlgmr.msra.gmra.mxu0 %vm325_vm1, %v2340_v57 }
 0x148   : > { %3844 = vmatprep.mubr.msk.bf16.mxu1 %vm325_vm1, %v4333_v7  ;;  %v633_v62 = vadd.f32 %v4348_v11, %v3588_v61  ;;  %3794 = vmatprep.mubr.msk.bf16.mxu0 %vm325_vm1, %v2342_v58 }
 0x149   : > { %v412_v63 = vpop.f32.mrf.mxu0 }
 0x14a   : > { %v759_v0 = vadd.f32 %v4489_v60, %v633_v62  ;;  %v625_v1 = vadd.f32 %v4358_v13, %v412_v63 }
 0x14b   : > { %v3589_v3 = vpop.f32.mrf.mxu0 }
 0x14c   : > { %v791_v4 = vmax.f32 %v759_v0, 0.0  ;;  %v757_v5 = vadd.f32 %v4489_v60, %v625_v1  ;;  %v636_v6 = vadd.f32 %v4364_v15, %v3589_v3  ;;  %v4512_v15 = vpop.f32.mrf.mxu1 }
 0x14d   : > { %v415_v7 = vpop.f32.mrf.mxu0 }
 0x14e   : > { %v3322_v11 = vpack.c.bf16 %v791_v4, %v791_v4  ;;  %v789_v13 = vmax.f32 %v757_v5, 0.0  ;;  %v760_v21 = vadd.f32 %v4489_v60, %v636_v6  ;;  %v628_v24 = vadd.f32 %v4372_v16, %v415_v7  ;;  %v4524_v41 = vpop.f32.mrf.mxu1 }
 0x14f   : > { %3845 = vmatmul.mubr.msk.bf16.gmra.mxu1 %vm325_vm1, %v4342_v9  ;;  %v3592_v25 = vpop.f32.mrf.mxu0  ;;  %3795 = vmatmul.mubr.msk.bf16.gmra.mxu0 %vm325_vm1, %v2344_v8 }
 0x150   : > { %3848 = vmatprep.mubr.msk.bf16.mxu1 %vm325_vm1, %v4354_v12  ;;  %951 = vst [vmem:[%s4506_s20 + $0x20] sm:$0xf] %v3322_v11  ;;  %v3320_v26 = vpack.c.bf16 %v789_v13, %v789_v13  ;;  %v792_v29 = vmax.f32 %v760_v21, 0.0  ;;  %v758_v30 = vadd.f32 %v4489_v60, %v628_v24  ;;  %v649_v33 = vadd.f32 %v4378_v18, %v3592_v25  ;;  %v4534_v61 = vpop.f32.mrf.mxu1  ;;  %v2352_v11 = vpop.permute.xlu1 %2351 }
 0x151   : > { %3798 = vmatprep.mubr.msk.bf16.mxu0 %vm325_vm1, %v2346_v10  ;;  %v428_v16 = vpop.f32.mrf.mxu0  ;;  %v2354_v21 = vpop.permute.xlu0 %2353 }
 0x152   : > { %949 = vst [vmem:[%s4506_s20] sm:$0xf] %v3320_v26  ;;  %v3323_v9 = vpack.c.bf16 %v792_v29, %v792_v29  ;;  %v790_v34 = vmax.f32 %v758_v30, 0.0  ;;  %v763_v37 = vadd.f32 %v4489_v60, %v649_v33  ;;  %v641_v39 = vadd.f32 %v4388_v20, %v428_v16  ;;  %v4546_v6 = vpop.f32.mrf.mxu1 }
 0x153   : > { %v3593_v12 = vpop.f32.mrf.mxu0 }
 0x154   : > { %952 = vst [vmem:[%s4506_s20 + $0x30] sm:$0xf] %v3323_v9  ;;  %v3321_v44 = vpack.c.bf16 %v790_v34, %v790_v34  ;;  %v795_v43 = vmax.f32 %v763_v37, 0.0  ;;  %v761_v18 = vadd.f32 %v4489_v60, %v641_v39  ;;  %v652_v47 = vadd.f32 %v4392_v22, %v3593_v12  ;;  %v4556_v29 = vpop.f32.mrf.mxu1 }
 0x155   : > { %v431_v50 = vpop.f32.mrf.mxu0 }
 0x156   : > { %950 = vst [vmem:[%s4506_s20 + $0x10] sm:$0xf] %v3321_v44  ;;  %v3326_v54 = vpack.c.bf16 %v795_v43, %v795_v43  ;;  %v793_v57 = vmax.f32 %v761_v18, 0.0  ;;  %v764_v20 = vadd.f32 %v4489_v60, %v652_v47  ;;  %v644_v58 = vadd.f32 %v4399_v23, %v431_v50  ;;  %v4566_v12 = vpop.f32.mrf.mxu1 }
 0x157   : > { %3849 = vmatmul.mubr.msk.bf16.gmra.mxu1 %vm325_vm1, %v4360_v14  ;;  %v3596_v62 = vpop.f32.mrf.mxu0  ;;  %3799 = vmatmul.mubr.msk.bf16.gmra.mxu0 %vm325_vm1, %v2348_v49  ;;  %v2356_v49 = vpop.permute.xlu1 %2355 }
 0x158   : > { %3852 = vmatprep.mubr.msk.bf16.mxu1 %vm325_vm1, %v4374_v17  ;;  %955 = vst [vmem:[%s4506_s20 + $0x60] sm:$0xf] %v3326_v54  ;;  %v3324_v22 = vpack.c.bf16 %v793_v57, %v793_v57  ;;  %v796_v63 = vmax.f32 %v764_v20, 0.0  ;;  %v762_v0 = vadd.f32 %v4489_v60, %v644_v58  ;;  %v665_v1 = vadd.f32 %v4404_v27, %v3596_v62 }
 0x159   : > { %3802 = vmatprep.mubr.msk.bf16.mxu0 %vm325_vm1, %v2350_v53  ;;  %v444_v23 = vpop.f32.mrf.mxu0  ;;  %v2358_v53 = vpop.permute.xlu0 %2357 }
 0x15a   : > { %953 = vst [vmem:[%s4506_s20 + $0x40] sm:$0xf] %v3324_v22  ;;  %v3327_v14 = vpack.c.bf16 %v796_v63, %v796_v63  ;;  %v794_v3 = vmax.f32 %v762_v0, 0.0  ;;  %v767_v4 = vadd.f32 %v4489_v60, %v665_v1  ;;  %v657_v5 = vadd.f32 %v4410_v28, %v444_v23 }
 0x15b   : > { %v3597_v17 = vpop.f32.mrf.mxu0 }
 0x15c   : > { %956 = vst [vmem:[%s4506_s20 + $0x70] sm:$0xf] %v3327_v14  ;;  %v3325_v8 = vpack.c.bf16 %v794_v3, %v794_v3  ;;  %v799_v7 = vmax.f32 %v767_v4, 0.0  ;;  %v765_v27 = vadd.f32 %v4489_v60, %v657_v5  ;;  %v668_v10 = vadd.f32 %v4414_v31, %v3597_v17 }
 0x15d   : > { %v447_v13 = vpop.f32.mrf.mxu0 }
 0x15e   : > { %954 = vst [vmem:[%s4506_s20 + $0x50] sm:$0xf] %v3325_v8  ;;  %v3330_v24 = vpack.c.bf16 %v799_v7, %v799_v7  ;;  %v797_v25 = vmax.f32 %v765_v27, 0.0  ;;  %v768_v28 = vadd.f32 %v4489_v60, %v668_v10  ;;  %v660_v26 = vadd.f32 %v4420_v32, %v447_v13 }
 0x15f   : > { %3853 = vmatmul.mubr.msk.bf16.gmra.mxu1 %vm325_vm1, %v4386_v19  ;;  %v3600_v30 = vpop.f32.mrf.mxu0  ;;  %3803 = vmatmul.mubr.msk.bf16.gmra.mxu0 %vm325_vm1, %v2352_v11  ;;  %v2360_v11 = vpop.permute.xlu1 %2359 }
 0x160   : > { %959 = vst [vmem:[%s4506_s20 + $0xa0] sm:$0xf] %v3330_v24  ;;  %v3328_v31 = vpack.c.bf16 %v797_v25, %v797_v25  ;;  %v800_v33 = vmax.f32 %v768_v28, 0.0  ;;  %v766_v16 = vadd.f32 %v4489_v60, %v660_v26  ;;  %v681_v9 = vadd.f32 %v4424_v35, %v3600_v30  ;;  %3806 = vmatprep.mubr.msk.bf16.mxu0 %vm325_vm1, %v2354_v21  ;;  %v2362_v21 = vpop.permute.xlu0 %2361 }
 0x161   : > { %v460_v34 = vpop.f32.mrf.mxu0 }
 0x162   : > { %957 = vst [vmem:[%s4506_s20 + $0x80] sm:$0xf] %v3328_v31  ;;  %v3331_v32 = vpack.c.bf16 %v800_v33, %v800_v33  ;;  %v798_v19 = vmax.f32 %v766_v16, 0.0  ;;  %v771_v37 = vadd.f32 %v4489_v60, %v681_v9  ;;  %v673_v39 = vadd.f32 %v4430_v36, %v460_v34 }
 0x163   : > { %v3601_v44 = vpop.f32.mrf.mxu0 }
 0x164   : > { %960 = vst [vmem:[%s4506_s20 + $0xb0] sm:$0xf] %v3331_v32  ;;  %v3329_v43 = vpack.c.bf16 %v798_v19, %v798_v19  ;;  %v803_v18 = vmax.f32 %v771_v37, 0.0  ;;  %v769_v35 = vadd.f32 %v4489_v60, %v673_v39  ;;  %v684_v47 = vadd.f32 %v4434_v42, %v3601_v44 }
 0x165   : > { %v463_v50 = vpop.f32.mrf.mxu0 }
 0x166   : > { %958 = vst [vmem:[%s4506_s20 + $0x90] sm:$0xf] %v3329_v43  ;;  %v3334_v54 = vpack.c.bf16 %v803_v18, %v803_v18  ;;  %v801_v57 = vmax.f32 %v769_v35, 0.0  ;;  %v772_v36 = vadd.f32 %v4489_v60, %v684_v47  ;;  %v676_v20 = vadd.f32 %v4440_v38, %v463_v50 }
 0x167   : > { %v4574_v58 = vpop.f32.mrf.mxu1  ;;  %v3604_v62 = vpop.f32.mrf.mxu0  ;;  %3807 = vmatmul.mubr.msk.bf16.gmra.mxu0 %vm325_vm1, %v2356_v49 }
 0x168   : > { %963 = vst [vmem:[%s4506_s20 + $0xe0] sm:$0xf] %v3334_v54  ;;  %v3332_v22 = vpack.c.bf16 %v801_v57, %v801_v57  ;;  %v804_v42 = vmax.f32 %v772_v36, 0.0  ;;  %v770_v63 = vadd.f32 %v4489_v60, %v676_v20  ;;  %v697_v0 = vadd.f32 %v4444_v45, %v3604_v62  ;;  %3810 = vmatprep.mubr.msk.bf16.mxu0 %vm325_vm1, %v2358_v53  ;;  %v2364_v49 = vpop.permute.xlu1 %2363  ;;  %v2366_v53 = vpop.permute.xlu0 %2365 }
 0x169   : > { %v4580_v1 = vpop.f32.mrf.mxu1  ;;  %v476_v23 = vpop.f32.mrf.mxu0 }
 0x16a   : > { %961 = vst [vmem:[%s4506_s20 + $0xc0] sm:$0xf] %v3332_v22  ;;  %v3335_v38 = vpack.c.bf16 %v804_v42, %v804_v42  ;;  %v802_v14 = vmax.f32 %v770_v63, 0.0  ;;  %v775_v3 = vadd.f32 %v4489_v60, %v697_v0  ;;  %v689_v4 = vadd.f32 %v4450_v40, %v476_v23 }
 0x16b   : > { %v4586_v5 = vpop.f32.mrf.mxu1  ;;  %v3605_v17 = vpop.f32.mrf.mxu0 }
 0x16c   : > { %964 = vst [vmem:[%s4506_s20 + $0xf0] sm:$0xf] %v3335_v38  ;;  %v3333_v8 = vpack.c.bf16 %v802_v14, %v802_v14  ;;  %v807_v45 = vmax.f32 %v775_v3, 0.0  ;;  %v773_v7 = vadd.f32 %v4489_v60, %v689_v4  ;;  %v700_v27 = vadd.f32 %v4454_v48, %v3605_v17 }
 0x16d   : > { %v4591_v10 = vpop.f32.mrf.mxu1  ;;  %v479_v13 = vpop.f32.mrf.mxu0 }
 0x16e   : > { %962 = vst [vmem:[%s4506_s20 + $0xd0] sm:$0xf] %v3333_v8  ;;  %v3338_v24 = vpack.c.bf16 %v807_v45, %v807_v45  ;;  %v805_v40 = vmax.f32 %v773_v7, 0.0  ;;  %v776_v25 = vadd.f32 %v4489_v60, %v700_v27  ;;  %v692_v28 = vadd.f32 %v4460_v46, %v479_v13 }
 0x16f   : > { %v4596_v26 = vpop.f32.mrf.mxu1  ;;  %v3608_v30 = vpop.f32.mrf.mxu0  ;;  %3811 = vmatmul.mubr.msk.bf16.gmra.mxu0 %vm325_vm1, %v2360_v11 }
 0x170   : > { %967 = vst [vmem:[%s4506_s20 + $0x120] sm:$0xf] %v3338_v24  ;;  %v3336_v48 = vpack.c.bf16 %v805_v40, %v805_v40  ;;  %v808_v31 = vmax.f32 %v776_v25, 0.0  ;;  %v774_v33 = vadd.f32 %v4489_v60, %v692_v28  ;;  %v713_v16 = vadd.f32 %v4464_v51, %v3608_v30  ;;  %3814 = vmatprep.mubr.msk.bf16.mxu0 %vm325_vm1, %v2362_v21  ;;  %v2368_v11 = vpop.permute.xlu1 %2367 }
 0x171   : > { %v4602_v9 = vpop.f32.mrf.mxu1  ;;  %v492_v34 = vpop.f32.mrf.mxu0 }
 0x172   : > { %965 = vst [vmem:[%s4506_s20 + $0x100] sm:$0xf] %v3336_v48  ;;  %v3339_v46 = vpack.c.bf16 %v808_v31, %v808_v31  ;;  %v806_v32 = vmax.f32 %v774_v33, 0.0  ;;  %v779_v19 = vadd.f32 %v4489_v60, %v713_v16  ;;  %v705_v37 = vadd.f32 %v4470_v52, %v492_v34 }
 0x173   : > { %v4608_v39 = vpop.f32.mrf.mxu1  ;;  %v3609_v44 = vpop.f32.mrf.mxu0 }
 0x174   : > { %968 = vst [vmem:[%s4506_s20 + $0x130] sm:$0xf] %v3339_v46  ;;  %v3337_v43 = vpack.c.bf16 %v806_v32, %v806_v32  ;;  %v811_v51 = vmax.f32 %v779_v19, 0.0  ;;  %v777_v18 = vadd.f32 %v4489_v60, %v705_v37  ;;  %v716_v35 = vadd.f32 %v4474_v55, %v3609_v44 }
 0x175   : > { %v4613_v47 = vpop.f32.mrf.mxu1  ;;  %v495_v50 = vpop.f32.mrf.mxu0 }
 0x176   : > { %966 = vst [vmem:[%s4506_s20 + $0x110] sm:$0xf] %v3337_v43  ;;  %v3342_v54 = vpack.c.bf16 %v811_v51, %v811_v51  ;;  %v809_v52 = vmax.f32 %v777_v18, 0.0  ;;  %v780_v57 = vadd.f32 %v4489_v60, %v716_v35  ;;  %v708_v36 = vadd.f32 %v4480_v56, %v495_v50 }
 0x177   : > { %v4618_v20 = vpop.f32.mrf.mxu1  ;;  %v3612_v62 = vpop.f32.mrf.mxu0  ;;  %3815 = vmatmul.mubr.msk.bf16.gmra.mxu0 %vm325_vm1, %v2364_v49 }
 0x178   : > { %971 = vst [vmem:[%s4506_s20 + $0x160] sm:$0xf] %v3342_v54  ;;  %v3340_v55 = vpack.c.bf16 %v809_v52, %v809_v52  ;;  %v812_v22 = vmax.f32 %v780_v57, 0.0  ;;  %v778_v42 = vadd.f32 %v4489_v60, %v708_v36  ;;  %v729_v63 = vadd.f32 %v4484_v59, %v3612_v62  ;;  %3818 = vmatprep.mubr.msk.bf16.mxu0 %vm325_vm1, %v2366_v53 }
 0x179   : > { %v4624_v0 = vpop.f32.mrf.mxu1  ;;  %v508_v23 = vpop.f32.mrf.mxu0 }
 0x17a   : > { %969 = vst [vmem:[%s4506_s20 + $0x140] sm:$0xf] %v3340_v55  ;;  %v3343_v56 = vpack.c.bf16 %v812_v22, %v812_v22  ;;  %v810_v38 = vmax.f32 %v778_v42, 0.0  ;;  %v783_v14 = vadd.f32 %v4489_v60, %v729_v63  ;;  %v721_v3 = vadd.f32 %v4499_v2, %v508_v23 }
 0x17b   : > { %v4630_v4 = vpop.f32.mrf.mxu1  ;;  %v3613_v17 = vpop.f32.mrf.mxu0 }
 0x17c   : > { %972 = vst [vmem:[%s4506_s20 + $0x170] sm:$0xf] %v3343_v56  ;;  %v3341_v8 = vpack.c.bf16 %v810_v38, %v810_v38  ;;  %v815_v59 = vmax.f32 %v783_v14, 0.0  ;;  %v781_v45 = vadd.f32 %v4489_v60, %v721_v3  ;;  %v732_v7 = vadd.f32 %v4512_v15, %v3613_v17 }
 0x17d   : > { %v4635_v27 = vpop.f32.mrf.mxu1  ;;  %v511_v13 = vpop.f32.mrf.mxu0 }
 0x17e   : > { %970 = vst [vmem:[%s4506_s20 + $0x150] sm:$0xf] %v3341_v8  ;;  %v3346_v21 = vpack.c.bf16 %v815_v59, %v815_v59  ;;  %v813_v24 = vmax.f32 %v781_v45, 0.0  ;;  %v784_v2 = vadd.f32 %v4489_v60, %v732_v7  ;;  %v724_v40 = vadd.f32 %v4524_v41, %v511_v13 }
 0x17f   : > { %v4640_v25 = vpop.f32.mrf.mxu1  ;;  %v3616_v28 = vpop.f32.mrf.mxu0  ;;  %3819 = vmatmul.mubr.msk.bf16.gmra.mxu0 %vm325_vm1, %v2368_v11 }
 0x180   : > { %975 = vst [vmem:[%s4506_s20 + $0x1a0] sm:$0xf] %v3346_v21  ;;  %v3344_v15 = vpack.c.bf16 %v813_v24, %v813_v24  ;;  %v816_v30 = vmax.f32 %v784_v2, 0.0  ;;  %v782_v48 = vadd.f32 %v4489_v60, %v724_v40  ;;  %v745_v31 = vadd.f32 %v4534_v61, %v3616_v28 }
 0x181   : > { %v4646_v33 = vpop.f32.mrf.mxu1  ;;  %v524_v16 = vpop.f32.mrf.mxu0 }
 0x182   : > { %973 = vst [vmem:[%s4506_s20 + $0x180] sm:$0xf] %v3344_v15  ;;  %v3347_v34 = vpack.c.bf16 %v816_v30, %v816_v30  ;;  %v814_v41 = vmax.f32 %v782_v48, 0.0  ;;  %v787_v46 = vadd.f32 %v4489_v60, %v745_v31  ;;  %v737_v32 = vadd.f32 %v4546_v6, %v524_v16 }
 0x183   : > { %v4651_v19 = vpop.f32.mrf.mxu1  ;;  %v3617_v37 = vpop.f32.mrf.mxu0 }
 0x184   : > { %976 = vst [vmem:[%s4506_s20 + $0x1b0] sm:$0xf] %v3347_v34  ;;  %v3345_v44 = vpack.c.bf16 %v814_v41, %v814_v41  ;;  %v819_v43 = vmax.f32 %v787_v46, 0.0  ;;  %v785_v61 = vadd.f32 %v4489_v60, %v737_v32  ;;  %v748_v51 = vadd.f32 %v4556_v29, %v3617_v37 }
 0x185   : > { %v4656_v18 = vpop.f32.mrf.mxu1  ;;  %v527_v35 = vpop.f32.mrf.mxu0 }
 0x186   : > { %974 = vst [vmem:[%s4506_s20 + $0x190] sm:$0xf] %v3345_v44  ;;  %v3350_v49 = vpack.c.bf16 %v819_v43, %v819_v43  ;;  %v817_v50 = vmax.f32 %v785_v61, 0.0  ;;  %v788_v6 = vadd.f32 %v4489_v60, %v748_v51  ;;  %v740_v53 = vadd.f32 %v4566_v12, %v527_v35 }
 0x187   : > { %v4661_v54 = vpop.f32.mrf.mxu1  ;;  %v3656_v52 = vpop.f32.mrf.mxu0 }
 0x188   : > { %979 = vst [vmem:[%s4506_s20 + $0x1e0] sm:$0xf] %v3350_v49  ;;  %v3348_v57 = vpack.c.bf16 %v817_v50, %v817_v50  ;;  %v820_v36 = vmax.f32 %v788_v6, 0.0  ;;  %v786_v29 = vadd.f32 %v4489_v60, %v740_v53  ;;  %v1355_v62 = vadd.f32 %v4574_v58, %v3656_v52 }
 0x189   : > { %v4666_v55 = vpop.f32.mrf.mxu1  ;;  %v1102_v22 = vpop.f32.mrf.mxu0 }
 0x18a   : > { %977 = vst [vmem:[%s4506_s20 + $0x1c0] sm:$0xf] %v3348_v57  ;;  %v3351_v42 = vpack.c.bf16 %v820_v36, %v820_v36  ;;  %v818_v63 = vmax.f32 %v786_v29, 0.0  ;;  %v1475_v12 = vadd.f32 %v4489_v60, %v1355_v62  ;;  %v1347_v23 = vadd.f32 %v4580_v1, %v1102_v22 }
 0x18b   : > { %v4671_v56 = vpop.f32.mrf.mxu1  ;;  %v3657_v38 = vpop.f32.mrf.mxu0 }
 0x18c   : > { %980 = vst [vmem:[%s4506_s20 + $0x1f0] sm:$0xf] %v3351_v42  ;;  %v3349_v14 = vpack.c.bf16 %v818_v63, %v818_v63  ;;  %v1507_v3 = vmax.f32 %v1475_v12, 0.0  ;;  %v1473_v58 = vadd.f32 %v4489_v60, %v1347_v23  ;;  %v1358_v17 = vadd.f32 %v4586_v5, %v3657_v38 }
 0x18d   : > { %v4676_v8 = vpop.f32.mrf.mxu1  ;;  %v1105_v59 = vpop.f32.mrf.mxu0 }
 0x18e   : > { %978 = vst [vmem:[%s4506_s20 + $0x1d0] sm:$0xf] %v3349_v14  ;;  %v3354_v45 = vpack.c.bf16 %v1507_v3, %v1507_v3  ;;  %v1505_v7 = vmax.f32 %v1473_v58, 0.0  ;;  %v1476_v1 = vadd.f32 %v4489_v60, %v1358_v17  ;;  %v1350_v11 = vadd.f32 %v4591_v10, %v1105_v59 }
 0x18f   : > { %v4681_v13 = vpop.f32.mrf.mxu1  ;;  %v3660_v21 = vpop.f32.mrf.mxu0 }
 0x190   : > { %1667 = vst [vmem:[%s4506_s20 + $0x24] sm:$0xf] %v3354_v45  ;;  %v3352_v24 = vpack.c.bf16 %v1505_v7, %v1505_v7  ;;  %v1508_v2 = vmax.f32 %v1476_v1, 0.0  ;;  %v1474_v5 = vadd.f32 %v4489_v60, %v1350_v11  ;;  %v1371_v40 = vadd.f32 %v4596_v26, %v3660_v21 }
 0x191   : > { %v4686_v28 = vpop.f32.mrf.mxu1  ;;  %v1118_v15 = vpop.f32.mrf.mxu0 }
 0x192   : > { %1665 = vst [vmem:[%s4506_s20 + $0x4] sm:$0xf] %v3352_v24  ;;  %v3355_v30 = vpack.c.bf16 %v1508_v2, %v1508_v2  ;;  %v1506_v48 = vmax.f32 %v1474_v5, 0.0  ;;  %v1479_v10 = vadd.f32 %v4489_v60, %v1371_v40  ;;  %v1363_v31 = vadd.f32 %v4602_v9, %v1118_v15 }
 0x193   : > { %v4691_v16 = vpop.f32.mrf.mxu1  ;;  %v3661_v34 = vpop.f32.mrf.mxu0 }
 0x194   : > { %1668 = vst [vmem:[%s4506_s20 + $0x34] sm:$0xf] %v3355_v30  ;;  %v3353_v41 = vpack.c.bf16 %v1506_v48, %v1506_v48  ;;  %v1511_v46 = vmax.f32 %v1479_v10, 0.0  ;;  %v1477_v26 = vadd.f32 %v4489_v60, %v1363_v31  ;;  %v1374_v32 = vadd.f32 %v4608_v39, %v3661_v34 }
 0x195   : > { %v4696_v37 = vpop.f32.mrf.mxu1  ;;  %v1121_v44 = vpop.f32.mrf.mxu0 }
 0x196   : > { %1666 = vst [vmem:[%s4506_s20 + $0x14] sm:$0xf] %v3353_v41  ;;  %v3358_v43 = vpack.c.bf16 %v1511_v46, %v1511_v46  ;;  %v1509_v61 = vmax.f32 %v1477_v26, 0.0  ;;  %v1480_v9 = vadd.f32 %v4489_v60, %v1374_v32  ;;  %v1366_v51 = vadd.f32 %v4613_v47, %v1121_v44 }
 0x197   : > { %v4701_v35 = vpop.f32.mrf.mxu1  ;;  %v3664_v49 = vpop.f32.mrf.mxu0 }
 0x198   : > { %1671 = vst [vmem:[%s4506_s20 + $0x64] sm:$0xf] %v3358_v43  ;;  %v3356_v50 = vpack.c.bf16 %v1509_v61, %v1509_v61  ;;  %v1512_v6 = vmax.f32 %v1480_v9, 0.0  ;;  %v1478_v39 = vadd.f32 %v4489_v60, %v1366_v51  ;;  %v1387_v53 = vadd.f32 %v4618_v20, %v3664_v49 }
 0x199   : > { %v4706_v52 = vpop.f32.mrf.mxu1  ;;  %v1134_v57 = vpop.f32.mrf.mxu0 }
 0x19a   : > { %1669 = vst [vmem:[%s4506_s20 + $0x44] sm:$0xf] %v3356_v50  ;;  %v3359_v36 = vpack.c.bf16 %v1512_v6, %v1512_v6  ;;  %v1510_v29 = vmax.f32 %v1478_v39, 0.0  ;;  %v1483_v47 = vadd.f32 %v4489_v60, %v1387_v53  ;;  %v1379_v62 = vadd.f32 %v4624_v0, %v1134_v57 }
 0x19b   : > { %v4711_v22 = vpop.f32.mrf.mxu1  ;;  %v3665_v42 = vpop.f32.mrf.mxu0 }
 0x19c   : > { %1672 = vst [vmem:[%s4506_s20 + $0x74] sm:$0xf] %v3359_v36  ;;  %v3357_v63 = vpack.c.bf16 %v1510_v29, %v1510_v29  ;;  %v1515_v12 = vmax.f32 %v1483_v47, 0.0  ;;  %v1481_v20 = vadd.f32 %v4489_v60, %v1379_v62  ;;  %v1390_v23 = vadd.f32 %v4630_v4, %v3665_v42 }
 0x19d   : > { %v4716_v38 = vpop.f32.mrf.mxu1  ;;  %v1137_v14 = vpop.f32.mrf.mxu0 }
 0x19e   : > { %1670 = vst [vmem:[%s4506_s20 + $0x54] sm:$0xf] %v3357_v63  ;;  %v3362_v3 = vpack.c.bf16 %v1515_v12, %v1515_v12  ;;  %v1513_v58 = vmax.f32 %v1481_v20, 0.0  ;;  %v1484_v0 = vadd.f32 %v4489_v60, %v1390_v23  ;;  %v1382_v17 = vadd.f32 %v4635_v27, %v1137_v14 }
 0x19f   : > { %v4721_v59 = vpop.f32.mrf.mxu1  ;;  %v3668_v45 = vpop.f32.mrf.mxu0 }
 0x1a0   : > { %1675 = vst [vmem:[%s4506_s20 + $0xa4] sm:$0xf] %v3362_v3  ;;  %v3360_v7 = vpack.c.bf16 %v1513_v58, %v1513_v58  ;;  %v1516_v1 = vmax.f32 %v1484_v0, 0.0  ;;  %v1482_v4 = vadd.f32 %v4489_v60, %v1382_v17  ;;  %v1403_v11 = vadd.f32 %v4640_v25, %v3668_v45 }
 0x1a1   : > { %v4726_v21 = vpop.f32.mrf.mxu1  ;;  %v1150_v24 = vpop.f32.mrf.mxu0 }
 0x1a2   : > { %1673 = vst [vmem:[%s4506_s20 + $0x84] sm:$0xf] %v3360_v7  ;;  %v3363_v2 = vpack.c.bf16 %v1516_v1, %v1516_v1  ;;  %v1514_v5 = vmax.f32 %v1482_v4, 0.0  ;;  %v1487_v27 = vadd.f32 %v4489_v60, %v1403_v11  ;;  %v1395_v40 = vadd.f32 %v4646_v33, %v1150_v24 }
 0x1a3   : > { %v4731_v15 = vpop.f32.mrf.mxu1  ;;  %v3669_v30 = vpop.f32.mrf.mxu0 }
 0x1a4   : > { %1676 = vst [vmem:[%s4506_s20 + $0xb4] sm:$0xf] %v3363_v2  ;;  %v3361_v48 = vpack.c.bf16 %v1514_v5, %v1514_v5  ;;  %v1519_v10 = vmax.f32 %v1487_v27, 0.0  ;;  %v1485_v25 = vadd.f32 %v4489_v60, %v1395_v40  ;;  %v1406_v31 = vadd.f32 %v4651_v19, %v3669_v30 }
 0x1a5   : > { %v4736_v34 = vpop.f32.mrf.mxu1  ;;  %v1153_v41 = vpop.f32.mrf.mxu0 }
 0x1a6   : > { %1674 = vst [vmem:[%s4506_s20 + $0x94] sm:$0xf] %v3361_v48  ;;  %v3366_v46 = vpack.c.bf16 %v1519_v10, %v1519_v10  ;;  %v1517_v26 = vmax.f32 %v1485_v25, 0.0  ;;  %v1488_v33 = vadd.f32 %v4489_v60, %v1406_v31  ;;  %v1398_v32 = vadd.f32 %v4656_v18, %v1153_v41 }
 0x1a7   : > { %v4741_v44 = vpop.f32.mrf.mxu1  ;;  %v3672_v43 = vpop.f32.mrf.mxu0 }
 0x1a8   : > { %1679 = vst [vmem:[%s4506_s20 + $0xe4] sm:$0xf] %v3366_v46  ;;  %v3364_v61 = vpack.c.bf16 %v1517_v26, %v1517_v26  ;;  %v1520_v9 = vmax.f32 %v1488_v33, 0.0  ;;  %v1486_v19 = vadd.f32 %v4489_v60, %v1398_v32  ;;  %v1419_v51 = vadd.f32 %v4661_v54, %v3672_v43 }
 0x1a9   : > { %v4746_v49 = vpop.f32.mrf.mxu1  ;;  %v1166_v50 = vpop.f32.mrf.mxu0 }
 0x1aa   : > { %1677 = vst [vmem:[%s4506_s20 + $0xc4] sm:$0xf] %v3364_v61  ;;  %v3367_v6 = vpack.c.bf16 %v1520_v9, %v1520_v9  ;;  %v1518_v39 = vmax.f32 %v1486_v19, 0.0  ;;  %v1491_v18 = vadd.f32 %v4489_v60, %v1419_v51  ;;  %v1411_v53 = vadd.f32 %v4666_v55, %v1166_v50 }
 0x1ab   : > { %v4751_v57 = vpop.f32.mrf.mxu1  ;;  %v3673_v36 = vpop.f32.mrf.mxu0 }
 0x1ac   : > { %1680 = vst [vmem:[%s4506_s20 + $0xf4] sm:$0xf] %v3367_v6  ;;  %v3365_v29 = vpack.c.bf16 %v1518_v39, %v1518_v39  ;;  %v1523_v47 = vmax.f32 %v1491_v18, 0.0  ;;  %v1489_v54 = vadd.f32 %v4489_v60, %v1411_v53  ;;  %v1422_v62 = vadd.f32 %v4671_v56, %v3673_v36 }
 0x1ad   : > { %v4756_v42 = vpop.f32.mrf.mxu1  ;;  %v1169_v63 = vpop.f32.mrf.mxu0 }
 0x1ae   : > { %1678 = vst [vmem:[%s4506_s20 + $0xd4] sm:$0xf] %v3365_v29  ;;  %v3370_v12 = vpack.c.bf16 %v1523_v47, %v1523_v47  ;;  %v1521_v20 = vmax.f32 %v1489_v54, 0.0  ;;  %v1492_v55 = vadd.f32 %v4489_v60, %v1422_v62  ;;  %v1414_v23 = vadd.f32 %v4676_v8, %v1169_v63 }
 0x1af   : > { %v4761_v14 = vpop.f32.mrf.mxu1  ;;  %v3676_v3 = vpop.f32.mrf.mxu0 }
 0x1b0   : > { %1683 = vst [vmem:[%s4506_s20 + $0x124] sm:$0xf] %v3370_v12  ;;  %v3368_v58 = vpack.c.bf16 %v1521_v20, %v1521_v20  ;;  %v1524_v0 = vmax.f32 %v1492_v55, 0.0  ;;  %v1490_v56 = vadd.f32 %v4489_v60, %v1414_v23  ;;  %v1435_v17 = vadd.f32 %v4681_v13, %v3676_v3 }
 0x1b1   : > { %v4766_v45 = vpop.f32.mrf.mxu1  ;;  %v1182_v7 = vpop.f32.mrf.mxu0 }
 0x1b2   : > { %1681 = vst [vmem:[%s4506_s20 + $0x104] sm:$0xf] %v3368_v58  ;;  %v3371_v1 = vpack.c.bf16 %v1524_v0, %v1524_v0  ;;  %v1522_v4 = vmax.f32 %v1490_v56, 0.0  ;;  %v1495_v8 = vadd.f32 %v4489_v60, %v1435_v17  ;;  %v1427_v11 = vadd.f32 %v4686_v28, %v1182_v7 }
 0x1b3   : > { %v4771_v24 = vpop.f32.mrf.mxu1  ;;  %v3677_v2 = vpop.f32.mrf.mxu0 }
 0x1b4   : > { %1684 = vst [vmem:[%s4506_s20 + $0x134] sm:$0xf] %v3371_v1  ;;  %v3369_v5 = vpack.c.bf16 %v1522_v4, %v1522_v4  ;;  %v1527_v27 = vmax.f32 %v1495_v8, 0.0  ;;  %v1493_v13 = vadd.f32 %v4489_v60, %v1427_v11  ;;  %v1438_v40 = vadd.f32 %v4691_v16, %v3677_v2 }
 0x1b5   : > { %v4776_v30 = vpop.f32.mrf.mxu1  ;;  %v1185_v48 = vpop.f32.mrf.mxu0 }
 0x1b6   : > { %1682 = vst [vmem:[%s4506_s20 + $0x114] sm:$0xf] %v3369_v5  ;;  %v3374_v10 = vpack.c.bf16 %v1527_v27, %v1527_v27  ;;  %v1525_v25 = vmax.f32 %v1493_v13, 0.0  ;;  %v1496_v28 = vadd.f32 %v4489_v60, %v1438_v40  ;;  %v1430_v31 = vadd.f32 %v4696_v37, %v1185_v48 }
 0x1b7   : > { %v4781_v41 = vpop.f32.mrf.mxu1  ;;  %v3680_v46 = vpop.f32.mrf.mxu0 }
 0x1b8   : > { %1687 = vst [vmem:[%s4506_s20 + $0x164] sm:$0xf] %v3374_v10  ;;  %v3372_v26 = vpack.c.bf16 %v1525_v25, %v1525_v25  ;;  %v1528_v33 = vmax.f32 %v1496_v28, 0.0  ;;  %v1494_v16 = vadd.f32 %v4489_v60, %v1430_v31  ;;  %v1451_v32 = vadd.f32 %v4701_v35, %v3680_v46 }
 0x1b9   : > { %v4786_v43 = vpop.f32.mrf.mxu1  ;;  %v1198_v61 = vpop.f32.mrf.mxu0 }
 0x1ba   : > { %1685 = vst [vmem:[%s4506_s20 + $0x144] sm:$0xf] %v3372_v26  ;;  %v3375_v9 = vpack.c.bf16 %v1528_v33, %v1528_v33  ;;  %v1526_v19 = vmax.f32 %v1494_v16, 0.0  ;;  %v1499_v37 = vadd.f32 %v4489_v60, %v1451_v32  ;;  %v1443_v51 = vadd.f32 %v4706_v52, %v1198_v61 }
 0x1bb   : > { %v4791_v50 = vpop.f32.mrf.mxu1  ;;  %v3681_v6 = vpop.f32.mrf.mxu0 }
 0x1bc   : > { %1688 = vst [vmem:[%s4506_s20 + $0x174] sm:$0xf] %v3375_v9  ;;  %v3373_v39 = vpack.c.bf16 %v1526_v19, %v1526_v19  ;;  %v1531_v18 = vmax.f32 %v1499_v37, 0.0  ;;  %v1497_v35 = vadd.f32 %v4489_v60, %v1443_v51  ;;  %v1454_v53 = vadd.f32 %v4711_v22, %v3681_v6 }
 0x1bd   : > { %v4796_v36 = vpop.f32.mrf.mxu1  ;;  %v1201_v29 = vpop.f32.mrf.mxu0 }
 0x1be   : > { %1686 = vst [vmem:[%s4506_s20 + $0x154] sm:$0xf] %v3373_v39  ;;  %v3378_v47 = vpack.c.bf16 %v1531_v18, %v1531_v18  ;;  %v1529_v54 = vmax.f32 %v1497_v35, 0.0  ;;  %v1500_v52 = vadd.f32 %v4489_v60, %v1454_v53  ;;  %v1446_v62 = vadd.f32 %v4716_v38, %v1201_v29 }
 0x1bf   : > { %v4801_v63 = vpop.f32.mrf.mxu1  ;;  %v3684_v12 = vpop.f32.mrf.mxu0 }
 0x1c0   : > { %1691 = vst [vmem:[%s4506_s20 + $0x1a4] sm:$0xf] %v3378_v47  ;;  %v3376_v20 = vpack.c.bf16 %v1529_v54, %v1529_v54  ;;  %v1532_v55 = vmax.f32 %v1500_v52, 0.0  ;;  %v1498_v22 = vadd.f32 %v4489_v60, %v1446_v62  ;;  %v1467_v23 = vadd.f32 %v4721_v59, %v3684_v12 }
 0x1c1   : > { %v4806_v3 = vpop.f32.mrf.mxu1  ;;  %v1214_v58 = vpop.f32.mrf.mxu0 }
 0x1c2   : > { %1689 = vst [vmem:[%s4506_s20 + $0x184] sm:$0xf] %v3376_v20  ;;  %v3379_v0 = vpack.c.bf16 %v1532_v55, %v1532_v55  ;;  %v1530_v56 = vmax.f32 %v1498_v22, 0.0  ;;  %v1503_v38 = vadd.f32 %v4489_v60, %v1467_v23  ;;  %v1459_v17 = vadd.f32 %v4726_v21, %v1214_v58 }
 0x1c3   : > { %v4811_v7 = vpop.f32.mrf.mxu1  ;;  %v3685_v1 = vpop.f32.mrf.mxu0 }
 0x1c4   : > { %1692 = vst [vmem:[%s4506_s20 + $0x1b4] sm:$0xf] %v3379_v0  ;;  %v3377_v4 = vpack.c.bf16 %v1530_v56, %v1530_v56  ;;  %v1535_v8 = vmax.f32 %v1503_v38, 0.0  ;;  %v1501_v59 = vadd.f32 %v4489_v60, %v1459_v17  ;;  %v1470_v11 = vadd.f32 %v4731_v15, %v3685_v1 }
 0x1c5   : > { %v4816_v2 = vpop.f32.mrf.mxu1  ;;  %v1217_v5 = vpop.f32.mrf.mxu0 }
 0x1c6   : > { %1690 = vst [vmem:[%s4506_s20 + $0x194] sm:$0xf] %v3377_v4  ;;  %v3382_v27 = vpack.c.bf16 %v1535_v8, %v1535_v8  ;;  %v1533_v13 = vmax.f32 %v1501_v59, 0.0  ;;  %v1504_v21 = vadd.f32 %v4489_v60, %v1470_v11  ;;  %v1462_v40 = vadd.f32 %v4736_v34, %v1217_v5 }
 0x1c7   : > { %v4821_v48 = vpop.f32.mrf.mxu1  ;;  %v3724_v10 = vpop.f32.mrf.mxu0 }
 0x1c8   : > { %1695 = vst [vmem:[%s4506_s20 + $0x1e4] sm:$0xf] %v3382_v27  ;;  %v3380_v25 = vpack.c.bf16 %v1533_v13, %v1533_v13  ;;  %v1536_v28 = vmax.f32 %v1504_v21, 0.0  ;;  %v1502_v15 = vadd.f32 %v4489_v60, %v1462_v40  ;;  %v1991_v31 = vadd.f32 %v4741_v44, %v3724_v10 }
 0x1c9   : > { %v4826_v46 = vpop.f32.mrf.mxu1  ;;  %v1818_v26 = vpop.f32.mrf.mxu0 }
 0x1ca   : > { %1693 = vst [vmem:[%s4506_s20 + $0x1c4] sm:$0xf] %v3380_v25  ;;  %v3383_v33 = vpack.c.bf16 %v1536_v28, %v1536_v28  ;;  %v1534_v16 = vmax.f32 %v1502_v15, 0.0  ;;  %v2111_v34 = vadd.f32 %v4489_v60, %v1991_v31  ;;  %v1983_v32 = vadd.f32 %v4746_v49, %v1818_v26 }
 0x1cb   : > { %v4831_v61 = vpop.f32.mrf.mxu1  ;;  %v3725_v9 = vpop.f32.mrf.mxu0 }
 0x1cc   : > { %1696 = vst [vmem:[%s4506_s20 + $0x1f4] sm:$0xf] %v3383_v33  ;;  %v3381_v19 = vpack.c.bf16 %v1534_v16, %v1534_v16  ;;  %v2143_v37 = vmax.f32 %v2111_v34, 0.0  ;;  %v2109_v44 = vadd.f32 %v4489_v60, %v1983_v32  ;;  %v1994_v51 = vadd.f32 %v4751_v57, %v3725_v9 }
 0x1cd   : > { %v4836_v6 = vpop.f32.mrf.mxu1  ;;  %v1821_v39 = vpop.f32.mrf.mxu0 }
 0x1ce   : > { %1694 = vst [vmem:[%s4506_s20 + $0x1d4] sm:$0xf] %v3381_v19  ;;  %v3386_v18 = vpack.c.bf16 %v2143_v37, %v2143_v37  ;;  %v2141_v35 = vmax.f32 %v2109_v44, 0.0  ;;  %v2112_v49 = vadd.f32 %v4489_v60, %v1994_v51  ;;  %v1986_v53 = vadd.f32 %v4756_v42, %v1821_v39 }
 0x1cf   : > { %v4841_v29 = vpop.f32.mrf.mxu1  ;;  %v3728_v47 = vpop.f32.mrf.mxu0 }
 0x1d0   : > { %2303 = vst [vmem:[%s4506_s20 + $0x28] sm:$0xf] %v3386_v18  ;;  %v3384_v54 = vpack.c.bf16 %v2141_v35, %v2141_v35  ;;  %v2144_v52 = vmax.f32 %v2112_v49, 0.0  ;;  %v2110_v57 = vadd.f32 %v4489_v60, %v1986_v53  ;;  %v2007_v62 = vadd.f32 %v4761_v14, %v3728_v47  ;;  %v4857_v14 = vld [vmem:[%s5097_s2] ss:$0 sm:$0xff] }
 0x1d1   : > { %v4846_v12 = vpop.f32.mrf.mxu1  ;;  %v1834_v20 = vpop.f32.mrf.mxu0 }
 0x1d2   : > { %2301 = vst [vmem:[%s4506_s20 + $0x8] sm:$0xf] %v3384_v54  ;;  %v3387_v55 = vpack.c.bf16 %v2144_v52, %v2144_v52  ;;  %v2142_v22 = vmax.f32 %v2110_v57, 0.0  ;;  %v2115_v42 = vadd.f32 %v4489_v60, %v2007_v62  ;;  %v1999_v23 = vadd.f32 %v4766_v45, %v1834_v20 }
 0x1d3   : > { %v4851_v58 = vpop.f32.mrf.mxu1  ;;  %v3729_v0 = vpop.f32.mrf.mxu0 }
 0x1d4   : > { %2304 = vst [vmem:[%s4506_s20 + $0x38] sm:$0xf] %v3387_v55  ;;  %v3385_v56 = vpack.c.bf16 %v2142_v22, %v2142_v22  ;;  %v2147_v38 = vmax.f32 %v2115_v42, 0.0  ;;  %v2113_v17 = vadd.f32 %v4857_v14, %v1999_v23  ;;  %v2010_v1 = vadd.f32 %v4771_v24, %v3729_v0 }
 0x1d5   : > { %v4861_v4 = vpop.f32.mrf.mxu1  ;;  %v1837_v60 = vpop.f32.mrf.mxu0 }
 0x1d6   : > { %2302 = vst [vmem:[%s4506_s20 + $0x18] sm:$0xf] %v3385_v56  ;;  %v3390_v45 = vpack.c.bf16 %v2147_v38, %v2147_v38  ;;  %v2145_v8 = vmax.f32 %v2113_v17, 0.0  ;;  %v2116_v59 = vadd.f32 %v4857_v14, %v2010_v1  ;;  %v2002_v11 = vadd.f32 %v4776_v30, %v1837_v60 }
 0x1d7   : > { %v4866_v5 = vpop.f32.mrf.mxu1  ;;  %v3732_v27 = vpop.f32.mrf.mxu0 }
 0x1d8   : > { %2307 = vst [vmem:[%s4506_s20 + $0x68] sm:$0xf] %v3390_v45  ;;  %v3388_v13 = vpack.c.bf16 %v2145_v8, %v2145_v8  ;;  %v2148_v21 = vmax.f32 %v2116_v59, 0.0  ;;  %v2114_v24 = vadd.f32 %v4857_v14, %v2002_v11  ;;  %v2023_v40 = vadd.f32 %v4781_v41, %v3732_v27 }
 0x1d9   : > { %v4871_v10 = vpop.f32.mrf.mxu1  ;;  %v1850_v25 = vpop.f32.mrf.mxu0 }
 0x1da   : > { %2305 = vst [vmem:[%s4506_s20 + $0x48] sm:$0xf] %v3388_v13  ;;  %v3391_v28 = vpack.c.bf16 %v2148_v21, %v2148_v21  ;;  %v2146_v15 = vmax.f32 %v2114_v24, 0.0  ;;  %v2119_v30 = vadd.f32 %v4857_v14, %v2023_v40  ;;  %v2015_v31 = vadd.f32 %v4786_v43, %v1850_v25 }
 0x1db   : > { %v4876_v26 = vpop.f32.mrf.mxu1  ;;  %v3733_v33 = vpop.f32.mrf.mxu0 }
 0x1dc   : > { %2308 = vst [vmem:[%s4506_s20 + $0x78] sm:$0xf] %v3391_v28  ;;  %v3389_v16 = vpack.c.bf16 %v2146_v15, %v2146_v15  ;;  %v2151_v34 = vmax.f32 %v2119_v30, 0.0  ;;  %v2117_v41 = vadd.f32 %v4857_v14, %v2015_v31  ;;  %v2026_v32 = vadd.f32 %v4791_v50, %v3733_v33 }
 0x1dd   : > { %v4881_v9 = vpop.f32.mrf.mxu1  ;;  %v1853_v19 = vpop.f32.mrf.mxu0 }
 0x1de   : > { %2306 = vst [vmem:[%s4506_s20 + $0x58] sm:$0xf] %v3389_v16  ;;  %v3394_v37 = vpack.c.bf16 %v2151_v34, %v2151_v34  ;;  %v2149_v44 = vmax.f32 %v2117_v41, 0.0  ;;  %v2120_v43 = vadd.f32 %v4857_v14, %v2026_v32  ;;  %v2018_v51 = vadd.f32 %v4796_v36, %v1853_v19 }
 0x1df   : > { %v4886_v39 = vpop.f32.mrf.mxu1  ;;  %v3736_v18 = vpop.f32.mrf.mxu0 }
 0x1e0   : > { %2311 = vst [vmem:[%s4506_s20 + $0xa8] sm:$0xf] %v3394_v37  ;;  %v3392_v35 = vpack.c.bf16 %v2149_v44, %v2149_v44  ;;  %v2152_v49 = vmax.f32 %v2120_v43, 0.0  ;;  %v2118_v50 = vadd.f32 %v4857_v14, %v2018_v51  ;;  %v2039_v53 = vadd.f32 %v4801_v63, %v3736_v18 }
 0x1e1   : > { %v4891_v47 = vpop.f32.mrf.mxu1  ;;  %v1866_v54 = vpop.f32.mrf.mxu0 }
 0x1e2   : > { %2309 = vst [vmem:[%s4506_s20 + $0x88] sm:$0xf] %v3392_v35  ;;  %v3395_v52 = vpack.c.bf16 %v2152_v49, %v2152_v49  ;;  %v2150_v57 = vmax.f32 %v2118_v50, 0.0  ;;  %v2123_v36 = vadd.f32 %v4857_v14, %v2039_v53  ;;  %v2031_v62 = vadd.f32 %v4806_v3, %v1866_v54 }
 0x1e3   : > { %v4896_v20 = vpop.f32.mrf.mxu1  ;;  %v3737_v55 = vpop.f32.mrf.mxu0 }
 0x1e4   : > { %2312 = vst [vmem:[%s4506_s20 + $0xb8] sm:$0xf] %v3395_v52  ;;  %v3393_v22 = vpack.c.bf16 %v2150_v57, %v2150_v57  ;;  %v2155_v42 = vmax.f32 %v2123_v36, 0.0  ;;  %v2121_v63 = vadd.f32 %v4857_v14, %v2031_v62  ;;  %v2042_v23 = vadd.f32 %v4811_v7, %v3737_v55 }
 0x1e5   : > { %v4901_v0 = vpop.f32.mrf.mxu1  ;;  %v1869_v56 = vpop.f32.mrf.mxu0 }
 0x1e6   : > { %2310 = vst [vmem:[%s4506_s20 + $0x98] sm:$0xf] %v3393_v22  ;;  %v3398_v38 = vpack.c.bf16 %v2155_v42, %v2155_v42  ;;  %v2153_v17 = vmax.f32 %v2121_v63, 0.0  ;;  %v2124_v3 = vadd.f32 %v4857_v14, %v2042_v23  ;;  %v2034_v1 = vadd.f32 %v4816_v2, %v1869_v56 }
 0x1e7   : > { %v4906_v60 = vpop.f32.mrf.mxu1  ;;  %v3740_v45 = vpop.f32.mrf.mxu0 }
 0x1e8   : > { %2315 = vst [vmem:[%s4506_s20 + $0xe8] sm:$0xf] %v3398_v38  ;;  %v3396_v8 = vpack.c.bf16 %v2153_v17, %v2153_v17  ;;  %v2156_v59 = vmax.f32 %v2124_v3, 0.0  ;;  %v2122_v7 = vadd.f32 %v4857_v14, %v2034_v1  ;;  %v2055_v11 = vadd.f32 %v4821_v48, %v3740_v45 }
 0x1e9   : > { %v4911_v27 = vpop.f32.mrf.mxu1  ;;  %v1882_v13 = vpop.f32.mrf.mxu0 }
 0x1ea   : > { %2313 = vst [vmem:[%s4506_s20 + $0xc8] sm:$0xf] %v3396_v8  ;;  %v3399_v21 = vpack.c.bf16 %v2156_v59, %v2156_v59  ;;  %v2154_v24 = vmax.f32 %v2122_v7, 0.0  ;;  %v2127_v2 = vadd.f32 %v4857_v14, %v2055_v11  ;;  %v2047_v40 = vadd.f32 %v4826_v46, %v1882_v13 }
 0x1eb   : > { %v4916_v25 = vpop.f32.mrf.mxu1  ;;  %v3741_v28 = vpop.f32.mrf.mxu0 }
 0x1ec   : > { %2316 = vst [vmem:[%s4506_s20 + $0xf8] sm:$0xf] %v3399_v21  ;;  %v3397_v15 = vpack.c.bf16 %v2154_v24, %v2154_v24  ;;  %v2159_v30 = vmax.f32 %v2127_v2, 0.0  ;;  %v2125_v48 = vadd.f32 %v4857_v14, %v2047_v40  ;;  %v2058_v31 = vadd.f32 %v4831_v61, %v3741_v28 }
 0x1ed   : > { %v4921_v33 = vpop.f32.mrf.mxu1  ;;  %v1885_v16 = vpop.f32.mrf.mxu0 }
 0x1ee   : > { %2314 = vst [vmem:[%s4506_s20 + $0xd8] sm:$0xf] %v3397_v15  ;;  %v3402_v34 = vpack.c.bf16 %v2159_v30, %v2159_v30  ;;  %v2157_v41 = vmax.f32 %v2125_v48, 0.0  ;;  %v2128_v46 = vadd.f32 %v4857_v14, %v2058_v31  ;;  %v2050_v32 = vadd.f32 %v4836_v6, %v1885_v16 }
 0x1ef   : > { %v4926_v19 = vpop.f32.mrf.mxu1  ;;  %v3744_v37 = vpop.f32.mrf.mxu0 }
 0x1f0   : > { %2319 = vst [vmem:[%s4506_s20 + $0x128] sm:$0xf] %v3402_v34  ;;  %v3400_v44 = vpack.c.bf16 %v2157_v41, %v2157_v41  ;;  %v2160_v43 = vmax.f32 %v2128_v46, 0.0  ;;  %v2126_v61 = vadd.f32 %v4857_v14, %v2050_v32  ;;  %v2071_v51 = vadd.f32 %v4841_v29, %v3744_v37 }
 0x1f1   : > { %v4931_v18 = vpop.f32.mrf.mxu1  ;;  %v1898_v35 = vpop.f32.mrf.mxu0 }
 0x1f2   : > { %2317 = vst [vmem:[%s4506_s20 + $0x108] sm:$0xf] %v3400_v44  ;;  %v3403_v49 = vpack.c.bf16 %v2160_v43, %v2160_v43  ;;  %v2158_v50 = vmax.f32 %v2126_v61, 0.0  ;;  %v2131_v6 = vadd.f32 %v4857_v14, %v2071_v51  ;;  %v2063_v53 = vadd.f32 %v4846_v12, %v1898_v35 }
 0x1f3   : > { %v4936_v54 = vpop.f32.mrf.mxu1  ;;  %v3745_v52 = vpop.f32.mrf.mxu0 }
 0x1f4   : > { %2320 = vst [vmem:[%s4506_s20 + $0x138] sm:$0xf] %v3403_v49  ;;  %v3401_v57 = vpack.c.bf16 %v2158_v50, %v2158_v50  ;;  %v2163_v36 = vmax.f32 %v2131_v6, 0.0  ;;  %v2129_v29 = vadd.f32 %v4857_v14, %v2063_v53  ;;  %v2074_v62 = vadd.f32 %v4851_v58, %v3745_v52 }
 0x1f5   : > { %v4941_v55 = vpop.f32.mrf.mxu1  ;;  %v1901_v22 = vpop.f32.mrf.mxu0 }
 0x1f6   : > { %2318 = vst [vmem:[%s4506_s20 + $0x118] sm:$0xf] %v3401_v57  ;;  %v3406_v42 = vpack.c.bf16 %v2163_v36, %v2163_v36  ;;  %v2161_v63 = vmax.f32 %v2129_v29, 0.0  ;;  %v2132_v12 = vadd.f32 %v4857_v14, %v2074_v62  ;;  %v2066_v23 = vadd.f32 %v4861_v4, %v1901_v22 }
 0x1f7   : > { %v4946_v56 = vpop.f32.mrf.mxu1  ;;  %v3748_v38 = vpop.f32.mrf.mxu0 }
 0x1f8   : > { %2323 = vst [vmem:[%s4506_s20 + $0x168] sm:$0xf] %v3406_v42  ;;  %v3404_v17 = vpack.c.bf16 %v2161_v63, %v2161_v63  ;;  %v2164_v3 = vmax.f32 %v2132_v12, 0.0  ;;  %v2130_v58 = vadd.f32 %v4857_v14, %v2066_v23  ;;  %v2087_v1 = vadd.f32 %v4866_v5, %v3748_v38 }
 0x1f9   : > { %v4951_v45 = vpop.f32.mrf.mxu1  ;;  %v1914_v8 = vpop.f32.mrf.mxu0 }
 0x1fa   : > { %2321 = vst [vmem:[%s4506_s20 + $0x148] sm:$0xf] %v3404_v17  ;;  %v3407_v59 = vpack.c.bf16 %v2164_v3, %v2164_v3  ;;  %v2162_v7 = vmax.f32 %v2130_v58, 0.0  ;;  %v2135_v4 = vadd.f32 %v4857_v14, %v2087_v1  ;;  %v2079_v11 = vadd.f32 %v4871_v10, %v1914_v8 }
 0x1fb   : > { %v4956_v13 = vpop.f32.mrf.mxu1  ;;  %v3749_v21 = vpop.f32.mrf.mxu0 }
 0x1fc   : > { %2324 = vst [vmem:[%s4506_s20 + $0x178] sm:$0xf] %v3407_v59  ;;  %v3405_v24 = vpack.c.bf16 %v2162_v7, %v2162_v7  ;;  %v2167_v2 = vmax.f32 %v2135_v4, 0.0  ;;  %v2133_v5 = vadd.f32 %v4857_v14, %v2079_v11  ;;  %v2090_v40 = vadd.f32 %v4876_v26, %v3749_v21 }
 0x1fd   : > { %v4961_v28 = vpop.f32.mrf.mxu1  ;;  %v1917_v15 = vpop.f32.mrf.mxu0 }
 0x1fe   : > { %2322 = vst [vmem:[%s4506_s20 + $0x158] sm:$0xf] %v3405_v24  ;;  %v3410_v30 = vpack.c.bf16 %v2167_v2, %v2167_v2  ;;  %v2165_v48 = vmax.f32 %v2133_v5, 0.0  ;;  %v2136_v10 = vadd.f32 %v4857_v14, %v2090_v40  ;;  %v2082_v31 = vadd.f32 %v4881_v9, %v1917_v15 }
 0x1ff   : > { %v4966_v16 = vpop.f32.mrf.mxu1  ;;  %v3752_v34 = vpop.f32.mrf.mxu0 }
 0x200   : > { %2327 = vst [vmem:[%s4506_s20 + $0x1a8] sm:$0xf] %v3410_v30  ;;  %v3408_v41 = vpack.c.bf16 %v2165_v48, %v2165_v48  ;;  %v2168_v46 = vmax.f32 %v2136_v10, 0.0  ;;  %v2134_v26 = vadd.f32 %v4857_v14, %v2082_v31  ;;  %v2103_v32 = vadd.f32 %v4886_v39, %v3752_v34 }
 0x201   : > { %v4971_v37 = vpop.f32.mrf.mxu1  ;;  %v1930_v44 = vpop.f32.mrf.mxu0 }
 0x202   : > { %2325 = vst [vmem:[%s4506_s20 + $0x188] sm:$0xf] %v3408_v41  ;;  %v3411_v43 = vpack.c.bf16 %v2168_v46, %v2168_v46  ;;  %v2166_v61 = vmax.f32 %v2134_v26, 0.0  ;;  %v2139_v9 = vadd.f32 %v4857_v14, %v2103_v32  ;;  %v2095_v51 = vadd.f32 %v4891_v47, %v1930_v44 }
 0x203   : > { %v4976_v35 = vpop.f32.mrf.mxu1  ;;  %v3753_v49 = vpop.f32.mrf.mxu0 }
 0x204   : > { %2328 = vst [vmem:[%s4506_s20 + $0x1b8] sm:$0xf] %v3411_v43  ;;  %v3409_v50 = vpack.c.bf16 %v2166_v61, %v2166_v61  ;;  %v2171_v6 = vmax.f32 %v2139_v9, 0.0  ;;  %v2137_v39 = vadd.f32 %v4857_v14, %v2095_v51  ;;  %v2106_v53 = vadd.f32 %v4896_v20, %v3753_v49 }
 0x205   : > { %v1933_v52 = vpop.f32.mrf.mxu0  ;;  %v4981_v57 = vpop.f32.mrf.mxu1 }
 0x206   : > { %2326 = vst [vmem:[%s4506_s20 + $0x198] sm:$0xf] %v3409_v50  ;;  %v3414_v36 = vpack.c.bf16 %v2171_v6, %v2171_v6  ;;  %v2169_v29 = vmax.f32 %v2137_v39, 0.0  ;;  %v2140_v47 = vadd.f32 %v4857_v14, %v2106_v53  ;;  %v2098_v62 = vadd.f32 %v4901_v0, %v1933_v52 }
 0x207   : > { %v3792_v22 = vpop.f32.mrf.mxu0  ;;  %v4989_v23 = vpop.f32.mrf.mxu1 }
 0x208   : > { %2331 = vst [vmem:[%s4506_s20 + $0x1e8] sm:$0xf] %v3414_v36  ;;  %v3412_v42 = vpack.c.bf16 %v2169_v29, %v2169_v29  ;;  %v2172_v63 = vmax.f32 %v2140_v47, 0.0  ;;  %v2138_v12 = vadd.f32 %v4857_v14, %v2098_v62  ;;  %v2627_v20 = vadd.f32 %v4906_v60, %v3792_v22 }
 0x209   : > { %v2454_v38 = vpop.f32.mrf.mxu0  ;;  %v4997_v4 = vpop.f32.mrf.mxu1 }
 0x20a   : > { %2329 = vst [vmem:[%s4506_s20 + $0x1c8] sm:$0xf] %v3412_v42  ;;  %v3415_v17 = vpack.c.bf16 %v2172_v63, %v2172_v63  ;;  %v2170_v3 = vmax.f32 %v2138_v12, 0.0  ;;  %v2747_v58 = vadd.f32 %v4857_v14, %v2627_v20  ;;  %v2619_v0 = vadd.f32 %v4911_v27, %v2454_v38 }
 0x20b   : > { %v3793_v1 = vpop.f32.mrf.mxu0  ;;  %v5005_v48 = vpop.f32.mrf.mxu1 }
 0x20c   : > { %2332 = vst [vmem:[%s4506_s20 + $0x1f8] sm:$0xf] %v3415_v17  ;;  %v3413_v8 = vpack.c.bf16 %v2170_v3, %v2170_v3  ;;  %v2779_v59 = vmax.f32 %v2747_v58, 0.0  ;;  %v2745_v7 = vadd.f32 %v4857_v14, %v2619_v0  ;;  %v2630_v60 = vadd.f32 %v4916_v25, %v3793_v1 }
 0x20d   : > { %v2457_v11 = vpop.f32.mrf.mxu0  ;;  %v5013_v43 = vpop.f32.mrf.mxu1 }
 0x20e   : > { %2330 = vst [vmem:[%s4506_s20 + $0x1d8] sm:$0xf] %v3413_v8  ;;  %v3418_v21 = vpack.c.bf16 %v2779_v59, %v2779_v59  ;;  %v2777_v24 = vmax.f32 %v2745_v7, 0.0  ;;  %v2748_v2 = vadd.f32 %v4857_v14, %v2630_v60  ;;  %v2622_v27 = vadd.f32 %v4921_v33, %v2457_v11 }
 0x20f   : > { %v3796_v5 = vpop.f32.mrf.mxu0  ;;  %v5021_v52 = vpop.f32.mrf.mxu1 }
 0x210   : > { %2939 = vst [vmem:[%s4506_s20 + $0x2c] sm:$0xf] %v3418_v21  ;;  %v3416_v40 = vpack.c.bf16 %v2777_v24, %v2777_v24  ;;  %v2780_v15 = vmax.f32 %v2748_v2, 0.0  ;;  %v2746_v30 = vadd.f32 %v4857_v14, %v2622_v27  ;;  %v2643_v25 = vadd.f32 %v4926_v19, %v3796_v5 }
 0x211   : > { %v2470_v10 = vpop.f32.mrf.mxu0  ;;  %v5029_v20 = vpop.f32.mrf.mxu1 }
 0x212   : > { %2937 = vst [vmem:[%s4506_s20 + $0xc] sm:$0xf] %v3416_v40  ;;  %v3419_v31 = vpack.c.bf16 %v2780_v15, %v2780_v15  ;;  %v2778_v34 = vmax.f32 %v2746_v30, 0.0  ;;  %v2751_v41 = vadd.f32 %v4857_v14, %v2643_v25  ;;  %v2635_v33 = vadd.f32 %v4931_v18, %v2470_v10 }
 0x213   : > { %v3797_v46 = vpop.f32.mrf.mxu0  ;;  %v5037_v7 = vpop.f32.mrf.mxu1 }
 0x214   : > { %2940 = vst [vmem:[%s4506_s20 + $0x3c] sm:$0xf] %v3419_v31  ;;  %v3417_v26 = vpack.c.bf16 %v2778_v34, %v2778_v34  ;;  %v2783_v32 = vmax.f32 %v2751_v41, 0.0  ;;  %v2749_v44 = vadd.f32 %v4857_v14, %v2635_v33  ;;  %v2646_v19 = vadd.f32 %v4936_v54, %v3797_v46 }
 0x215   : > { %v2473_v61 = vpop.f32.mrf.mxu0  ;;  %v2701_v15 = vpop.f32.mrf.mxu1 }
 0x216   : > { %2938 = vst [vmem:[%s4506_s20 + $0x1c] sm:$0xf] %v3417_v26  ;;  %v3422_v9 = vpack.c.bf16 %v2783_v32, %v2783_v32  ;;  %v2781_v51 = vmax.f32 %v2749_v44, 0.0  ;;  %v2752_v49 = vadd.f32 %v4857_v14, %v2646_v19  ;;  %v2638_v18 = vadd.f32 %v4941_v55, %v2473_v61 }
 0x217   : > { %v3800_v50 = vpop.f32.mrf.mxu0 }
 0x218   : > { %2943 = vst [vmem:[%s4506_s20 + $0x6c] sm:$0xf] %v3422_v9  ;;  %v3420_v6 = vpack.c.bf16 %v2781_v51, %v2781_v51  ;;  %v2784_v39 = vmax.f32 %v2752_v49, 0.0  ;;  %v2750_v53 = vadd.f32 %v4857_v14, %v2638_v18  ;;  %v2659_v54 = vadd.f32 %v4946_v56, %v3800_v50 }
 0x219   : > { %v2486_v36 = vpop.f32.mrf.mxu0 }
 0x21a   : > { %2941 = vst [vmem:[%s4506_s20 + $0x4c] sm:$0xf] %v3420_v6  ;;  %v3423_v29 = vpack.c.bf16 %v2784_v39, %v2784_v39  ;;  %v2782_v47 = vmax.f32 %v2750_v53, 0.0  ;;  %v2755_v62 = vadd.f32 %v4857_v14, %v2659_v54  ;;  %v2651_v55 = vadd.f32 %v4951_v45, %v2486_v36 }
 0x21b   : > { %v3801_v22 = vpop.f32.mrf.mxu0 }
 0x21c   : > { %2944 = vst [vmem:[%s4506_s20 + $0x7c] sm:$0xf] %v3423_v29  ;;  %v3421_v42 = vpack.c.bf16 %v2782_v47, %v2782_v47  ;;  %v2787_v63 = vmax.f32 %v2755_v62, 0.0  ;;  %v2753_v12 = vadd.f32 %v4857_v14, %v2651_v55  ;;  %v2662_v56 = vadd.f32 %v4956_v13, %v3801_v22 }
 0x21d   : > { %v2489_v38 = vpop.f32.mrf.mxu0 }
 0x21e   : > { %2942 = vst [vmem:[%s4506_s20 + $0x5c] sm:$0xf] %v3421_v42  ;;  %v3426_v17 = vpack.c.bf16 %v2787_v63, %v2787_v63  ;;  %v2785_v3 = vmax.f32 %v2753_v12, 0.0  ;;  %v2756_v58 = vadd.f32 %v4857_v14, %v2662_v56  ;;  %v2654_v45 = vadd.f32 %v4961_v28, %v2489_v38 }
 0x21f   : > { %v3804_v0 = vpop.f32.mrf.mxu0 }
 0x220   : > { %2947 = vst [vmem:[%s4506_s20 + $0xac] sm:$0xf] %v3426_v17  ;;  %v3424_v1 = vpack.c.bf16 %v2785_v3, %v2785_v3  ;;  %v2788_v8 = vmax.f32 %v2756_v58, 0.0  ;;  %v2754_v59 = vadd.f32 %v4857_v14, %v2654_v45  ;;  %v2675_v13 = vadd.f32 %v4966_v16, %v3804_v0 }
 0x221   : > { %v2502_v60 = vpop.f32.mrf.mxu0 }
 0x222   : > { %2945 = vst [vmem:[%s4506_s20 + $0x8c] sm:$0xf] %v3424_v1  ;;  %v3427_v11 = vpack.c.bf16 %v2788_v8, %v2788_v8  ;;  %v2786_v21 = vmax.f32 %v2754_v59, 0.0  ;;  %v2759_v24 = vadd.f32 %v4857_v14, %v2675_v13  ;;  %v2667_v28 = vadd.f32 %v4971_v37, %v2502_v60 }
 0x223   : > { %v3805_v2 = vpop.f32.mrf.mxu0 }
 0x224   : > { %2948 = vst [vmem:[%s4506_s20 + $0xbc] sm:$0xf] %v3427_v11  ;;  %v3425_v27 = vpack.c.bf16 %v2786_v21, %v2786_v21  ;;  %v2791_v5 = vmax.f32 %v2759_v24, 0.0  ;;  %v2757_v40 = vadd.f32 %v4857_v14, %v2667_v28  ;;  %v2678_v16 = vadd.f32 %v4976_v35, %v3805_v2  ;;  %v3850_v35 = vpop.f32.mrf.mxu1 }
 0x225   : > { %v2505_v30 = vpop.f32.mrf.mxu0 }
 0x226   : > { %2946 = vst [vmem:[%s4506_s20 + $0x9c] sm:$0xf] %v3425_v27  ;;  %v3430_v25 = vpack.c.bf16 %v2791_v5, %v2791_v5  ;;  %v2789_v10 = vmax.f32 %v2757_v40, 0.0  ;;  %v2760_v31 = vadd.f32 %v4857_v14, %v2678_v16  ;;  %v2670_v34 = vadd.f32 %v4981_v57, %v2505_v30 }
 0x227   : > { %v3808_v37 = vpop.f32.mrf.mxu0 }
 0x228   : > { %2951 = vst [vmem:[%s4506_s20 + $0xec] sm:$0xf] %v3430_v25  ;;  %v3428_v41 = vpack.c.bf16 %v2789_v10, %v2789_v10  ;;  %v2792_v33 = vmax.f32 %v2760_v31, 0.0  ;;  %v2758_v46 = vadd.f32 %v4857_v14, %v2670_v34  ;;  %v2691_v26 = vadd.f32 %v4989_v23, %v3808_v37  ;;  %v2714_v23 = vpop.f32.mrf.mxu1 }
 0x229   : > { %v2518_v32 = vpop.f32.mrf.mxu0 }
 0x22a   : > { %2949 = vst [vmem:[%s4506_s20 + $0xcc] sm:$0xf] %v3428_v41  ;;  %v3431_v44 = vpack.c.bf16 %v2792_v33, %v2792_v33  ;;  %v2790_v19 = vmax.f32 %v2758_v46, 0.0  ;;  %v2763_v61 = vadd.f32 %v4857_v14, %v2691_v26  ;;  %v2683_v9 = vadd.f32 %v4997_v4, %v2518_v32 }
 0x22b   : > { %v3809_v57 = vpop.f32.mrf.mxu0 }
 0x22c   : > { %2952 = vst [vmem:[%s4506_s20 + $0xfc] sm:$0xf] %v3431_v44  ;;  %v3429_v51 = vpack.c.bf16 %v2790_v19, %v2790_v19  ;;  %v2795_v49 = vmax.f32 %v2763_v61, 0.0  ;;  %v2761_v18 = vadd.f32 %v4857_v14, %v2683_v9  ;;  %v2694_v50 = vadd.f32 %v5005_v48, %v3809_v57  ;;  %v3851_v48 = vpop.f32.mrf.mxu1 }
 0x22d   : > { %v2521_v6 = vpop.f32.mrf.mxu0 }
 0x22e   : > { %2950 = vst [vmem:[%s4506_s20 + $0xdc] sm:$0xf] %v3429_v51  ;;  %v3434_v39 = vpack.c.bf16 %v2795_v49, %v2795_v49  ;;  %v2793_v53 = vmax.f32 %v2761_v18, 0.0  ;;  %v2764_v54 = vadd.f32 %v4857_v14, %v2694_v50  ;;  %v2686_v36 = vadd.f32 %v5013_v43, %v2521_v6 }
 0x22f   : > { %v3812_v4 = vpop.f32.mrf.mxu0 }
 0x230   : > { %2955 = vst [vmem:[%s4506_s20 + $0x12c] sm:$0xf] %v3434_v39  ;;  %v3432_v29 = vpack.c.bf16 %v2793_v53, %v2793_v53  ;;  %v2796_v47 = vmax.f32 %v2764_v54, 0.0  ;;  %v2762_v62 = vadd.f32 %v4857_v14, %v2686_v36  ;;  %v2707_v55 = vadd.f32 %v5021_v52, %v3812_v4  ;;  %v2717_v52 = vpop.f32.mrf.mxu1 }
 0x231   : > { %v2534_v22 = vpop.f32.mrf.mxu0 }
 0x232   : > { %2953 = vst [vmem:[%s4506_s20 + $0x10c] sm:$0xf] %v3432_v29  ;;  %v3435_v42 = vpack.c.bf16 %v2796_v47, %v2796_v47  ;;  %v2794_v63 = vmax.f32 %v2762_v62, 0.0  ;;  %v2767_v12 = vadd.f32 %v4857_v14, %v2707_v55  ;;  %v2699_v56 = vadd.f32 %v5029_v20, %v2534_v22  ;;  %v3854_v24 = vpop.f32.mrf.mxu1 }
 0x233   : > { %v3813_v43 = vpop.f32.mrf.mxu0 }
 0x234   : > { %2956 = vst [vmem:[%s4506_s20 + $0x13c] sm:$0xf] %v3435_v42  ;;  %v3433_v38 = vpack.c.bf16 %v2794_v63, %v2794_v63  ;;  %v2799_v17 = vmax.f32 %v2767_v12, 0.0  ;;  %v2765_v3 = vadd.f32 %v4857_v14, %v2699_v56  ;;  %v2710_v58 = vadd.f32 %v5037_v7, %v3813_v43  ;;  %v2730_v10 = vpop.f32.mrf.mxu1 }
 0x235   : > { %v2537_v45 = vpop.f32.mrf.mxu0 }
 0x236   : > { %2954 = vst [vmem:[%s4506_s20 + $0x11c] sm:$0xf] %v3433_v38  ;;  %v3438_v0 = vpack.c.bf16 %v2799_v17, %v2799_v17  ;;  %v2797_v1 = vmax.f32 %v2765_v3, 0.0  ;;  %v2768_v8 = vadd.f32 %v4857_v14, %v2710_v58  ;;  %v2702_v59 = vadd.f32 %v2701_v15, %v2537_v45  ;;  %v3855_v19 = vpop.f32.mrf.mxu1 }
 0x237   : > { %v3816_v13 = vpop.f32.mrf.mxu0 }
 0x238   : > { %2959 = vst [vmem:[%s4506_s20 + $0x16c] sm:$0xf] %v3438_v0  ;;  %v3436_v20 = vpack.c.bf16 %v2797_v1, %v2797_v1  ;;  %v2800_v60 = vmax.f32 %v2768_v8, 0.0  ;;  %v2766_v11 = vadd.f32 %v4857_v14, %v2702_v59  ;;  %v2723_v21 = vadd.f32 %v3850_v35, %v3816_v13  ;;  %v2733_v53 = vpop.f32.mrf.mxu1 }
 0x239   : > { %v2550_v7 = vpop.f32.mrf.mxu0 }
 0x23a   : > { %2957 = vst [vmem:[%s4506_s20 + $0x14c] sm:$0xf] %v3436_v20  ;;  %v3439_v28 = vpack.c.bf16 %v2800_v60, %v2800_v60  ;;  %v2798_v2 = vmax.f32 %v2766_v11, 0.0  ;;  %v2771_v27 = vadd.f32 %v4857_v14, %v2723_v21  ;;  %v2715_v5 = vadd.f32 %v2714_v23, %v2550_v7 }
 0x23b   : > { %v3817_v40 = vpop.f32.mrf.mxu0 }
 0x23c   : > { %2960 = vst [vmem:[%s4506_s20 + $0x17c] sm:$0xf] %v3439_v28  ;;  %v3437_v16 = vpack.c.bf16 %v2798_v2, %v2798_v2  ;;  %v2803_v15 = vmax.f32 %v2771_v27, 0.0  ;;  %v2769_v30 = vadd.f32 %v4857_v14, %v2715_v5  ;;  %v2726_v25 = vadd.f32 %v3851_v48, %v3817_v40 }
 0x23d   : > { %v2553_v31 = vpop.f32.mrf.mxu0 }
 0x23e   : > { %2958 = vst [vmem:[%s4506_s20 + $0x15c] sm:$0xf] %v3437_v16  ;;  %v3442_v34 = vpack.c.bf16 %v2803_v15, %v2803_v15  ;;  %v2801_v37 = vmax.f32 %v2769_v30, 0.0  ;;  %v2772_v41 = vadd.f32 %v4857_v14, %v2726_v25  ;;  %v2718_v33 = vadd.f32 %v2717_v52, %v2553_v31 }
 0x23f   : > { %v3820_v46 = vpop.f32.mrf.mxu0 }
 0x240   : > { %2963 = vst [vmem:[%s4506_s20 + $0x1ac] sm:$0xf] %v3442_v34  ;;  %v3440_v26 = vpack.c.bf16 %v2801_v37, %v2801_v37  ;;  %v2804_v35 = vmax.f32 %v2772_v41, 0.0  ;;  %v2770_v32 = vadd.f32 %v4857_v14, %v2718_v33  ;;  %v2739_v44 = vadd.f32 %v3854_v24, %v3820_v46 }
 0x241   : > { %v2566_v61 = vpop.f32.mrf.mxu0 }
 0x242   : > { %2961 = vst [vmem:[%s4506_s20 + $0x18c] sm:$0xf] %v3440_v26  ;;  %v3443_v9 = vpack.c.bf16 %v2804_v35, %v2804_v35  ;;  %v2802_v57 = vmax.f32 %v2770_v32, 0.0  ;;  %v2775_v51 = vadd.f32 %v4857_v14, %v2739_v44  ;;  %v2731_v49 = vadd.f32 %v2730_v10, %v2566_v61 }
 0x243   : > { %v3821_v18 = vpop.f32.mrf.mxu0 }
 0x244   : > { %2964 = vst [vmem:[%s4506_s20 + $0x1bc] sm:$0xf] %v3443_v9  ;;  %v3441_v50 = vpack.c.bf16 %v2802_v57, %v2802_v57  ;;  %v2807_v23 = vmax.f32 %v2775_v51, 0.0  ;;  %v2773_v6 = vadd.f32 %v4857_v14, %v2731_v49  ;;  %v2742_v39 = vadd.f32 %v3855_v19, %v3821_v18 }
 0x245   : > { %v2569_v54 = vpop.f32.mrf.mxu0 }
 0x246   : > { %2962 = vst [vmem:[%s4506_s20 + $0x19c] sm:$0xf] %v3441_v50  ;;  %v3446_v36 = vpack.c.bf16 %v2807_v23, %v2807_v23  ;;  %v2805_v4 = vmax.f32 %v2773_v6, 0.0  ;;  %v2776_v29 = vadd.f32 %v4857_v14, %v2742_v39  ;;  %v2734_v47 = vadd.f32 %v2733_v53, %v2569_v54 }
 0x248   : > { %2967 = vst [vmem:[%s4506_s20 + $0x1ec] sm:$0xf] %v3446_v36  ;;  %v3444_v62 = vpack.c.bf16 %v2805_v4, %v2805_v4  ;;  %v2808_v55 = vmax.f32 %v2776_v29, 0.0  ;;  %v2774_v48 = vadd.f32 %v4857_v14, %v2734_v47 }
 0x24a   : > { %2965 = vst [vmem:[%s4506_s20 + $0x1cc] sm:$0xf] %v3444_v62  ;;  %v3447_v22 = vpack.c.bf16 %v2808_v55, %v2808_v55  ;;  %v2806_v42 = vmax.f32 %v2774_v48, 0.0 }
 0x24c   : > { %2968 = vst [vmem:[%s4506_s20 + $0x1fc] sm:$0xf] %v3447_v22  ;;  %v3445_v63 = vpack.c.bf16 %v2806_v42, %v2806_v42 }
 0x24e   : > { %2966 = vst [vmem:[%s4506_s20 + $0x1dc] sm:$0xf] %v3445_v63 }
 0x24f PF: > { %s13_s12 = sadd.s32 1, %s3900_s12  }
 0x250   : > { %p10_p4 = scmp.ge.s32.totalorder %s13_s12, 4  }
 0x252   :  { %12 = sbr.rel (!%p10_p4) target bundleno = 1 (0x1), region = 69 }

</bundles_post_ra>
